<compile_context>
chip_gen: v7x
topology: tpu7x:2x2x1
jax: 0.10.0
libtpu: 0.0.40
codegen_flags: <defaults>
</compile_context>

<pallas_src>
import jax
import jax.numpy as jnp
from jax.experimental import pallas as pl
from jax.experimental.pallas import tpu as pltpu


# ---------------------------------------------------------------------------
# In-kernel building blocks (operate on channels-last (Bb, L, C) values)
# ---------------------------------------------------------------------------
def _conv_relu_im2col(h, w_ref, b_ref):
    """'same' Conv1d(k=3, pad=1) + bias + ReLU as a single im2col matmul.

    h     : (Bb, L, Cin)   f32 activations, channels-last
    w_ref : (3*Cin, Cout)  weights in compute dtype, rows ordered (tap, cin)
    b_ref : (1, Cout)      f32 bias
    returns (Bb, L, Cout)  f32
    """
    Bb, L, Cin = h.shape
    Cout = w_ref.shape[1]

    zrow = jnp.zeros((Bb, 1, Cin), h.dtype)
    hpad = jnp.concatenate([zrow, h, zrow], axis=1)               # (Bb, L+2, Cin)
    patches = jnp.concatenate(                                    # (Bb, L, 3*Cin)
        [hpad[:, 0:L, :], hpad[:, 1:L + 1, :], hpad[:, 2:L + 2, :]], axis=-1)
    patches = patches.reshape(Bb * L, 3 * Cin).astype(w_ref.dtype)

    y = jnp.dot(patches, w_ref[...], preferred_element_type=jnp.float32)
    y = jnp.maximum(y + b_ref[...], 0.0)                          # f32 bias + ReLU
    return y.reshape(Bb, L, Cout)


def _maxpool1d_2(h):
    """max_pool1d(kernel=2, stride=2) along L.  h: (Bb, L, C) -> (Bb, L//2, C)."""
    Bb, L, C = h.shape
    return jnp.max(h.reshape(Bb, L // 2, 2, C), axis=2)


# ---------------------------------------------------------------------------
# Fused kernel: conv1+relu+pool -> conv2+relu+pool -> conv3+relu -> mean -> fc
# ---------------------------------------------------------------------------
def audio_encoder_kernel(x_ref, w1_ref, b1_ref, w2_ref, b2_ref,
                         w3_ref, b3_ref, fcw_ref, fcb_ref, o_ref):
    Bb, L, _ = x_ref.shape
    Hp = o_ref.shape[2]

    x = x_ref[...].astype(jnp.float32)                   # (Bb, L, 1)

    h = _conv_relu_im2col(x, w1_ref, b1_ref)             # (Bb, L,    64)
    h = _maxpool1d_2(h)                                  # (Bb, L/2,  64)
    h = _conv_relu_im2col(h, w2_ref, b2_ref)             # (Bb, L/2, 128)
    h = _maxpool1d_2(h)                                  # (Bb, L/4, 128)
    h = _conv_relu_im2col(h, w3_ref, b3_ref)             # (Bb, L/4, 256)

    pooled = jnp.mean(h, axis=1)                         # AdaptiveAvgPool1d(1): (Bb, 256)

    out = jnp.dot(pooled.astype(fcw_ref.dtype), fcw_ref[...],
                  preferred_element_type=jnp.float32)    # (Bb, Hp)  lane-padded hidden
    out = out + fcb_ref[...]
    o_ref[...] = out.reshape(Bb, 1, Hp).astype(o_ref.dtype)


# ---------------------------------------------------------------------------
# One-time parameter preparation (layout conversion done outside the forward)
# ---------------------------------------------------------------------------
def prepare_params(p, compute_dtype=jnp.bfloat16, lane=128):
    """Convert PyTorch-layout params to the kernel layout.

    Conv1d (Cout, Cin, K) -> im2col weight (K*Cin, Cout), row index = tap*Cin + cin.
    Linear (H, 256)       -> (256, Hp) with H zero-padded up to a multiple of 128 lanes.
    """
    def im2col_w(w):
        cout, cin, k = w.shape
        return jnp.transpose(w, (2, 1, 0)).reshape(k * cin, cout).astype(compute_dtype)

    H = p["fcw"].shape[0]
    Hp = ((H + lane - 1) // lane) * lane
    fcw = jnp.zeros((p["fcw"].shape[1], Hp), compute_dtype)
    fcw = fcw.at[:, :H].set(p["fcw"].T.astype(compute_dtype))
    fcb = jnp.zeros((1, Hp), jnp.float32).at[:, :H].set(p["fcb"][None, :].astype(jnp.float32))

    return {
        "w1": im2col_w(p["w1"]), "b1": p["b1"].reshape(1, -1).astype(jnp.float32),
        "w2": im2col_w(p["w2"]), "b2": p["b2"].reshape(1, -1).astype(jnp.float32),
        "w3": im2col_w(p["w3"]), "b3": p["b3"].reshape(1, -1).astype(jnp.float32),
        "fcw": fcw, "fcb": fcb,
        "hidden": int(H), "hidden_padded": int(Hp),
    }


def _auto_batch_block(B, L, vmem_budget_bytes=6 << 20):
    """Largest divisor of B whose fused in-kernel activation footprint fits the budget.

    Rough per-batch-element bytes across all fused stages (f32 activations + bf16 patches):
      conv1 out      L    *  64 * 4
      conv2 patches  L/2  * 192 * 2, conv2 out L/2 * 128 * 4
      conv3 patches  L/4  * 384 * 2, conv3 out L/4 * 256 * 4
    ~= 1.2 KiB per time-step, rounded up to 1.5 KiB for headroom.
    """
    per_elem = max(L, 1) * 1536
    bb = max(1, min(B, vmem_budget_bytes // per_elem))
    while B % bb:
        bb -= 1
    return bb


# ---------------------------------------------------------------------------
# Forward wrapper
# ---------------------------------------------------------------------------
def audio_encoder_pallas(x_ncl, kp, *, batch_block=None):
    """x_ncl: (B, 1, L) in PyTorch NCL layout.  Returns (B, hidden) f32."""
    B, Cin, L = x_ncl.shape
    assert Cin == 1, "AudioEncoder takes a single input channel"
    assert L % 4 == 0, "two MaxPool1d(2) stages require L % 4 == 0 (PyTorch floors odd L)"

    if batch_block is None:
        batch_block = _auto_batch_block(B, L)
    assert B % batch_block == 0
    Bb = batch_block

    # Cin == 1: NCL -> channels-last (B, L, 1) is a pure reshape (no data movement).
    x = x_ncl.reshape(B, L, 1)

    H, Hp = kp["hidden"], kp["hidden_padded"]
    C1 = kp["b1"].shape[1]
    C2 = kp["b2"].shape[1]
    C3 = kp["b3"].shape[1]

    out = pl.pallas_call(
        audio_encoder_kernel,
        grid=(B // Bb,),
        in_specs=[
            pl.BlockSpec((Bb, L, 1), lambda b: (b, 0, 0)),       # x
            pl.BlockSpec((3 * 1, C1), lambda b: (0, 0)),         # w1 (im2col)
            pl.BlockSpec((1, C1), lambda b: (0, 0)),             # b1
            pl.BlockSpec((3 * C1, C2), lambda b: (0, 0)),        # w2 (im2col)
            pl.BlockSpec((1, C2), lambda b: (0, 0)),             # b2
            pl.BlockSpec((3 * C2, C3), lambda b: (0, 0)),        # w3 (im2col)
            pl.BlockSpec((1, C3), lambda b: (0, 0)),             # b3
            pl.BlockSpec((C3, Hp), lambda b: (0, 0)),            # fc weight (lane-padded)
            pl.BlockSpec((1, Hp), lambda b: (0, 0)),             # fc bias   (lane-padded)
        ],
        out_specs=pl.BlockSpec((Bb, 1, Hp), lambda b: (b, 0, 0)),
        out_shape=jax.ShapeDtypeStruct((B, 1, Hp), jnp.float32),
        compiler_params=pltpu.CompilerParams(
            dimension_semantics=("parallel",),                   # v7x: shard batch over 2 TCs
            vmem_limit_bytes=32 * 1024 * 1024),
    )(x, kp["w1"], kp["b1"], kp["w2"], kp["b2"],
      kp["w3"], kp["b3"], kp["fcw"], kp["fcb"])

    return out[:, 0, :H]


# ---------------------------------------------------------------------------
# Deterministic parameter init (PyTorch-style uniform bounds, same shapes)
# ---------------------------------------------------------------------------
def init_params(key, hidden_size):
    ks = jax.random.split(key, 8)

    def u(k, shape, fan_in):
        bound = 1.0 / jnp.sqrt(jnp.float32(fan_in))
        return jax.random.uniform(k, shape, jnp.float32, -bound, bound)

    return {
        "w1": u(ks[0], (64, 1, 3), 1 * 3),      "b1": u(ks[1], (64,), 1 * 3),
        "w2": u(ks[2], (128, 64, 3), 64 * 3),   "b2": u(ks[3], (128,), 64 * 3),
        "w3": u(ks[4], (256, 128, 3), 128 * 3), "b3": u(ks[5], (256,), 128 * 3),
        "fcw": u(ks[6], (hidden_size, 256), 256), "fcb": u(ks[7], (hidden_size,), 256),
    }


# ---------------------------------------------------------------------------
# Pure-JAX reference (mirrors the PyTorch forward exactly, all f32)
# ---------------------------------------------------------------------------
def ref_forward(x, p):
    def conv(h, w, b):
        y = jax.lax.conv_general_dilated(
            h, w, window_strides=(1,), padding=((1, 1),),
            dimension_numbers=("NCH", "OIH", "NCH"))
        return y + b[None, :, None]

    h = jax.nn.relu(conv(x, p["w1"], p["b1"]))
    B, C, L = h.shape
    h = h.reshape(B, C, L // 2, 2).max(-1)                  # max_pool1d(2)
    h = jax.nn.relu(conv(h, p["w2"], p["b2"]))
    B, C, L = h.shape
    h = h.reshape(B, C, L // 2, 2).max(-1)
    h = jax.nn.relu(conv(h, p["w3"], p["b3"]))
    h = h.mean(-1)                                          # AdaptiveAvgPool1d(1) + squeeze
    return h @ p["fcw"].T + p["fcb"]


if __name__ == "__main__":
    B, L, HIDDEN = 2, 32, 32                                # small test shapes; L % 4 == 0
    key = jax.random.PRNGKey(0)
    k_x, k_p = jax.random.split(key)

    x = jax.random.normal(k_x, (B, 1, L), jnp.float32)      # PyTorch NCL input
    params = init_params(k_p, HIDDEN)
    ref = ref_forward(x, params)

    # 1) f32 compute path, auto batch blocking (whole batch in one grid step here):
    #    bit-tight correctness check against the f32 reference.
    kp_f32 = prepare_params(params, compute_dtype=jnp.float32)
    out_f32 = jax.block_until_ready(audio_encoder_pallas(x, kp_f32))
    assert out_f32.shape == (B, HIDDEN), out_f32.shape
    assert jnp.allclose(out_f32, ref, rtol=1e-4, atol=1e-4), \
        float(jnp.max(jnp.abs(out_f32 - ref)))

    # 2) Same f32 path but forced per-element grid steps (exercises the multi-step grid path).
    out_f32_g = jax.block_until_ready(audio_encoder_pallas(x, kp_f32, batch_block=1))
    assert jnp.allclose(out_f32_g, ref, rtol=1e-4, atol=1e-4), \
        float(jnp.max(jnp.abs(out_f32_g - ref)))

    # 3) bf16 MXU path (default / fast): f32 accumulation, looser tolerance vs f32 reference.
    kp_bf16 = prepare_params(params, compute_dtype=jnp.bfloat16)
    out_bf16 = jax.block_until_ready(audio_encoder_pallas(x, kp_bf16))
    assert out_bf16.shape == (B, HIDDEN), out_bf16.shape
    assert jnp.allclose(out_bf16, ref, rtol=2e-2, atol=2e-2), \
        float(jnp.max(jnp.abs(out_bf16 - ref)))

    print("KERNEL_OK")
</pallas_src>

<mosaic_0001>
module attributes {stable_mosaic.version = 11 : i64} {
  func.func @audio_encoder_kernel(%arg0: i32, %arg1: memref<2x32x1xf32, #tpu.memory_space<vmem>>, %arg2: memref<3x64xf32, #tpu.memory_space<vmem>>, %arg3: memref<1x64xf32, #tpu.memory_space<vmem>>, %arg4: memref<192x128xf32, #tpu.memory_space<vmem>>, %arg5: memref<1x128xf32, #tpu.memory_space<vmem>>, %arg6: memref<384x256xf32, #tpu.memory_space<vmem>>, %arg7: memref<1x256xf32, #tpu.memory_space<vmem>>, %arg8: memref<256x128xf32, #tpu.memory_space<vmem>>, %arg9: memref<1x128xf32, #tpu.memory_space<vmem>>, %arg10: memref<2x1x128xf32, #tpu.memory_space<vmem>>) attributes {dimension_semantics = [#tpu.dimension_semantics<parallel>], iteration_bounds = array<i64: 1>, scalar_prefetch = 0 : i64, scratch_operands = 0 : i64, tpu.core_type = #tpu.core_type<tc>, window_params = [{transform_indices = @transform_0, window_bounds = array<i64: 2, 32, 1>}, {pipeline_mode = #tpu.pipeline_mode<synchronous>, transform_indices = @transform_1, window_bounds = array<i64: 3, 64>}, {pipeline_mode = #tpu.pipeline_mode<synchronous>, transform_indices = @transform_2, window_bounds = array<i64: 1, 64>}, {pipeline_mode = #tpu.pipeline_mode<synchronous>, transform_indices = @transform_3, window_bounds = array<i64: 192, 128>}, {pipeline_mode = #tpu.pipeline_mode<synchronous>, transform_indices = @transform_4, window_bounds = array<i64: 1, 128>}, {pipeline_mode = #tpu.pipeline_mode<synchronous>, transform_indices = @transform_5, window_bounds = array<i64: 384, 256>}, {pipeline_mode = #tpu.pipeline_mode<synchronous>, transform_indices = @transform_6, window_bounds = array<i64: 1, 256>}, {pipeline_mode = #tpu.pipeline_mode<synchronous>, transform_indices = @transform_7, window_bounds = array<i64: 256, 128>}, {pipeline_mode = #tpu.pipeline_mode<synchronous>, transform_indices = @transform_8, window_bounds = array<i64: 1, 128>}, {transform_indices = @transform_9, window_bounds = array<i64: 2, 1, 128>}]} {
    %c0 = arith.constant 0 : index
    %c0_0 = arith.constant 0 : index
    %c0_1 = arith.constant 0 : index
    %0 = vector.load %arg1[%c0, %c0_0, %c0_1] : memref<2x32x1xf32, #tpu.memory_space<vmem>>, vector<2x32x1xf32>
    %cst = arith.constant 0.000000e+00 : f32
    %1 = vector.broadcast %cst : f32 to vector<2x1x1xf32>
    %2 = tpu.concatenate %1, %0, %1 in 1 : vector<2x1x1xf32>, vector<2x32x1xf32>, vector<2x1x1xf32> -> vector<2x34x1xf32>
    %3 = vector.extract_strided_slice %2 {offsets = [0, 0, 0], sizes = [2, 32, 1], strides = [1, 1, 1]} : vector<2x34x1xf32> to vector<2x32x1xf32>
    %4 = vector.extract_strided_slice %2 {offsets = [0, 1, 0], sizes = [2, 32, 1], strides = [1, 1, 1]} : vector<2x34x1xf32> to vector<2x32x1xf32>
    %5 = vector.extract_strided_slice %2 {offsets = [0, 2, 0], sizes = [2, 32, 1], strides = [1, 1, 1]} : vector<2x34x1xf32> to vector<2x32x1xf32>
    %6 = tpu.concatenate %3, %4, %5 in 2 : vector<2x32x1xf32>, vector<2x32x1xf32>, vector<2x32x1xf32> -> vector<2x32x3xf32>
    %7 = vector.shape_cast %6 : vector<2x32x3xf32> to vector<64x3xf32>
    %c0_2 = arith.constant 0 : index
    %c0_3 = arith.constant 0 : index
    %8 = vector.load %arg2[%c0_2, %c0_3] : memref<3x64xf32, #tpu.memory_space<vmem>>, vector<3x64xf32>
    %cst_4 = arith.constant dense<0.000000e+00> : vector<64x64xf32>
    %9 = tpu.matmul %7, %8, %cst_4 {dimension_numbers = #tpu.dot_dimension_numbers<[1], [0], [0], [1], [0, 0, 1, 1], [], []>} : vector<64x3xf32>, vector<3x64xf32>, vector<64x64xf32> -> vector<64x64xf32>
    %c0_5 = arith.constant 0 : index
    %c0_6 = arith.constant 0 : index
    %10 = vector.load %arg3[%c0_5, %c0_6] : memref<1x64xf32, #tpu.memory_space<vmem>>, vector<1x64xf32>
    %11 = vector.broadcast %10 : vector<1x64xf32> to vector<64x64xf32>
    %12 = arith.addf %9, %11 : vector<64x64xf32>
    %cst_7 = arith.constant 0.000000e+00 : f32
    %13 = vector.broadcast %cst_7 : f32 to vector<64x64xf32>
    %14 = arith.maximumf %12, %13 : vector<64x64xf32>
    %15 = vector.shape_cast %14 : vector<64x64xf32> to vector<2x32x64xf32>
    %16 = vector.shape_cast %15 : vector<2x32x64xf32> to vector<2x16x2x64xf32>
    %cst_8 = arith.constant dense<0xFF800000> : vector<2x16x64xf32>
    %17 = vector.multi_reduction <maximumf>, %16, %cst_8 [2] : vector<2x16x2x64xf32> to vector<2x16x64xf32>
    %cst_9 = arith.constant 0.000000e+00 : f32
    %18 = vector.broadcast %cst_9 : f32 to vector<2x1x64xf32>
    %19 = tpu.concatenate %18, %17, %18 in 1 : vector<2x1x64xf32>, vector<2x16x64xf32>, vector<2x1x64xf32> -> vector<2x18x64xf32>
    %20 = vector.extract_strided_slice %19 {offsets = [0, 0, 0], sizes = [2, 16, 64], strides = [1, 1, 1]} : vector<2x18x64xf32> to vector<2x16x64xf32>
    %21 = vector.extract_strided_slice %19 {offsets = [0, 1, 0], sizes = [2, 16, 64], strides = [1, 1, 1]} : vector<2x18x64xf32> to vector<2x16x64xf32>
    %22 = vector.extract_strided_slice %19 {offsets = [0, 2, 0], sizes = [2, 16, 64], strides = [1, 1, 1]} : vector<2x18x64xf32> to vector<2x16x64xf32>
    %23 = tpu.concatenate %20, %21, %22 in 2 : vector<2x16x64xf32>, vector<2x16x64xf32>, vector<2x16x64xf32> -> vector<2x16x192xf32>
    %24 = vector.shape_cast %23 : vector<2x16x192xf32> to vector<32x192xf32>
    %c0_10 = arith.constant 0 : index
    %c0_11 = arith.constant 0 : index
    %25 = vector.load %arg4[%c0_10, %c0_11] : memref<192x128xf32, #tpu.memory_space<vmem>>, vector<192x128xf32>
    %cst_12 = arith.constant dense<0.000000e+00> : vector<32x128xf32>
    %26 = tpu.matmul %24, %25, %cst_12 {dimension_numbers = #tpu.dot_dimension_numbers<[1], [0], [0], [1], [0, 0, 1, 1], [], []>} : vector<32x192xf32>, vector<192x128xf32>, vector<32x128xf32> -> vector<32x128xf32>
    %c0_13 = arith.constant 0 : index
    %c0_14 = arith.constant 0 : index
    %27 = vector.load %arg5[%c0_13, %c0_14] : memref<1x128xf32, #tpu.memory_space<vmem>>, vector<1x128xf32>
    %28 = vector.broadcast %27 : vector<1x128xf32> to vector<32x128xf32>
    %29 = arith.addf %26, %28 : vector<32x128xf32>
    %cst_15 = arith.constant 0.000000e+00 : f32
    %30 = vector.broadcast %cst_15 : f32 to vector<32x128xf32>
    %31 = arith.maximumf %29, %30 : vector<32x128xf32>
    %32 = vector.shape_cast %31 : vector<32x128xf32> to vector<2x16x128xf32>
    %33 = vector.shape_cast %32 : vector<2x16x128xf32> to vector<2x8x2x128xf32>
    %cst_16 = arith.constant dense<0xFF800000> : vector<2x8x128xf32>
    %34 = vector.multi_reduction <maximumf>, %33, %cst_16 [2] : vector<2x8x2x128xf32> to vector<2x8x128xf32>
    %cst_17 = arith.constant 0.000000e+00 : f32
    %35 = vector.broadcast %cst_17 : f32 to vector<2x1x128xf32>
    %36 = tpu.concatenate %35, %34, %35 in 1 : vector<2x1x128xf32>, vector<2x8x128xf32>, vector<2x1x128xf32> -> vector<2x10x128xf32>
    %37 = vector.extract_strided_slice %36 {offsets = [0, 0, 0], sizes = [2, 8, 128], strides = [1, 1, 1]} : vector<2x10x128xf32> to vector<2x8x128xf32>
    %38 = vector.extract_strided_slice %36 {offsets = [0, 1, 0], sizes = [2, 8, 128], strides = [1, 1, 1]} : vector<2x10x128xf32> to vector<2x8x128xf32>
    %39 = vector.extract_strided_slice %36 {offsets = [0, 2, 0], sizes = [2, 8, 128], strides = [1, 1, 1]} : vector<2x10x128xf32> to vector<2x8x128xf32>
    %40 = tpu.concatenate %37, %38, %39 in 2 : vector<2x8x128xf32>, vector<2x8x128xf32>, vector<2x8x128xf32> -> vector<2x8x384xf32>
    %41 = vector.shape_cast %40 : vector<2x8x384xf32> to vector<16x384xf32>
    %c0_18 = arith.constant 0 : index
    %c0_19 = arith.constant 0 : index
    %42 = vector.load %arg6[%c0_18, %c0_19] : memref<384x256xf32, #tpu.memory_space<vmem>>, vector<384x256xf32>
    %cst_20 = arith.constant dense<0.000000e+00> : vector<16x256xf32>
    %43 = tpu.matmul %41, %42, %cst_20 {dimension_numbers = #tpu.dot_dimension_numbers<[1], [0], [0], [1], [0, 0, 1, 1], [], []>} : vector<16x384xf32>, vector<384x256xf32>, vector<16x256xf32> -> vector<16x256xf32>
    %c0_21 = arith.constant 0 : index
    %c0_22 = arith.constant 0 : index
    %44 = vector.load %arg7[%c0_21, %c0_22] : memref<1x256xf32, #tpu.memory_space<vmem>>, vector<1x256xf32>
    %45 = vector.broadcast %44 : vector<1x256xf32> to vector<16x256xf32>
    %46 = arith.addf %43, %45 : vector<16x256xf32>
    %cst_23 = arith.constant 0.000000e+00 : f32
    %47 = vector.broadcast %cst_23 : f32 to vector<16x256xf32>
    %48 = arith.maximumf %46, %47 : vector<16x256xf32>
    %49 = vector.shape_cast %48 : vector<16x256xf32> to vector<2x8x256xf32>
    %cst_24 = arith.constant dense<0.000000e+00> : vector<2x256xf32>
    %50 = vector.multi_reduction <add>, %49, %cst_24 [1] : vector<2x8x256xf32> to vector<2x256xf32>
    %cst_25 = arith.constant 8.000000e+00 : f32
    %51 = vector.broadcast %cst_25 : f32 to vector<2x256xf32>
    %52 = arith.divf %50, %51 : vector<2x256xf32>
    %c0_26 = arith.constant 0 : index
    %c0_27 = arith.constant 0 : index
    %53 = vector.load %arg8[%c0_26, %c0_27] : memref<256x128xf32, #tpu.memory_space<vmem>>, vector<256x128xf32>
    %cst_28 = arith.constant dense<0.000000e+00> : vector<2x128xf32>
    %54 = tpu.matmul %52, %53, %cst_28 {dimension_numbers = #tpu.dot_dimension_numbers<[1], [0], [0], [1], [0, 0, 1, 1], [], []>} : vector<2x256xf32>, vector<256x128xf32>, vector<2x128xf32> -> vector<2x128xf32>
    %c0_29 = arith.constant 0 : index
    %c0_30 = arith.constant 0 : index
    %55 = vector.load %arg9[%c0_29, %c0_30] : memref<1x128xf32, #tpu.memory_space<vmem>>, vector<1x128xf32>
    %56 = vector.broadcast %55 : vector<1x128xf32> to vector<2x128xf32>
    %57 = arith.addf %54, %56 : vector<2x128xf32>
    %58 = vector.shape_cast %57 : vector<2x128xf32> to vector<2x1x128xf32>
    %c0_31 = arith.constant 0 : index
    %c0_32 = arith.constant 0 : index
    %c0_33 = arith.constant 0 : index
    %59 = vector.load %arg10[%c0_31, %c0_32, %c0_33] : memref<2x1x128xf32, #tpu.memory_space<vmem>>, vector<2x1x128xf32>
    tpu.vector_store %arg10[%c0_31, %c0_32, %c0_33], %58 {strides = array<i32>} : memref<2x1x128xf32, #tpu.memory_space<vmem>>, vector<2x1x128xf32>,
    return
  }
  func.func @transform_0(%arg0: i32) -> (i32, i32, i32) {
    %c0_i32 = arith.constant 0 : i32
    %c0_i32_0 = arith.constant 0 : i32
    %c0_i32_1 = arith.constant 0 : i32
    return %arg0, %c0_i32, %c0_i32_0 : i32, i32, i32
  }
  func.func @transform_1(%arg0: i32) -> (i32, i32) {
    %c0_i32 = arith.constant 0 : i32
    %c0_i32_0 = arith.constant 0 : i32
    %c0_i32_1 = arith.constant 0 : i32
    return %c0_i32, %c0_i32_0 : i32, i32
  }
  func.func @transform_2(%arg0: i32) -> (i32, i32) {
    %c0_i32 = arith.constant 0 : i32
    %c0_i32_0 = arith.constant 0 : i32
    %c0_i32_1 = arith.constant 0 : i32
    return %c0_i32, %c0_i32_0 : i32, i32
  }
  func.func @transform_3(%arg0: i32) -> (i32, i32) {
    %c0_i32 = arith.constant 0 : i32
    %c0_i32_0 = arith.constant 0 : i32
    %c0_i32_1 = arith.constant 0 : i32
    return %c0_i32, %c0_i32_0 : i32, i32
  }
  func.func @transform_4(%arg0: i32) -> (i32, i32) {
    %c0_i32 = arith.constant 0 : i32
    %c0_i32_0 = arith.constant 0 : i32
    %c0_i32_1 = arith.constant 0 : i32
    return %c0_i32, %c0_i32_0 : i32, i32
  }
  func.func @transform_5(%arg0: i32) -> (i32, i32) {
    %c0_i32 = arith.constant 0 : i32
    %c0_i32_0 = arith.constant 0 : i32
    %c0_i32_1 = arith.constant 0 : i32
    return %c0_i32, %c0_i32_0 : i32, i32
  }
  func.func @transform_6(%arg0: i32) -> (i32, i32) {
    %c0_i32 = arith.constant 0 : i32
    %c0_i32_0 = arith.constant 0 : i32
    %c0_i32_1 = arith.constant 0 : i32
    return %c0_i32, %c0_i32_0 : i32, i32
  }
  func.func @transform_7(%arg0: i32) -> (i32, i32) {
    %c0_i32 = arith.constant 0 : i32
    %c0_i32_0 = arith.constant 0 : i32
    %c0_i32_1 = arith.constant 0 : i32
    return %c0_i32, %c0_i32_0 : i32, i32
  }
  func.func @transform_8(%arg0: i32) -> (i32, i32) {
    %c0_i32 = arith.constant 0 : i32
    %c0_i32_0 = arith.constant 0 : i32
    %c0_i32_1 = arith.constant 0 : i32
    return %c0_i32, %c0_i32_0 : i32, i32
  }
  func.func @transform_9(%arg0: i32) -> (i32, i32, i32) {
    %c0_i32 = arith.constant 0 : i32
    %c0_i32_0 = arith.constant 0 : i32
    %c0_i32_1 = arith.constant 0 : i32
    return %arg0, %c0_i32, %c0_i32_0 : i32, i32, i32
  }
}

</mosaic_0001>

<bundles_post_ra>
// kernel: tpu_custom_call.1
= control target key start
LH: loop header
LB: loop body
LE: loop exit
PB: predicated region body
PF: predicated region fallthrough
CT: control target
= control target key end

     0   :  { %14 = vsyncpa [#allocation3], 0  ;;  %s2677_s0 = inlined_call_operand.vmem [shape: f32[2,32,1], index: 0, kind: input, shape index: {}]   ;;  %s2678_s1 = inlined_call_operand.vmem [shape: f32[3,64], index: 1, kind: input, shape index: {}]   ;;  %s2679_s2 = inlined_call_operand.vmem [shape: f32[1,64], index: 2, kind: input, shape index: {}]   ;;  %s2680_s3 = inlined_call_operand.hbm [shape: f32[192,128], index: 3, kind: input, shape index: {}]   ;;  %s2681_s4 = inlined_call_operand.vmem [shape: f32[1,128], index: 4, kind: input, shape index: {}]   ;;  %s2682_s5 = inlined_call_operand.hbm [shape: f32[384,256], index: 5, kind: input, shape index: {}]   ;;  %s2683_s6 = inlined_call_operand.vmem [shape: f32[1,256], index: 6, kind: input, shape index: {}]   ;;  %s2684_s7 = inlined_call_operand.hbm [shape: f32[256,128], index: 7, kind: input, shape index: {}]   ;;  %s2685_s8 = inlined_call_operand.vmem [shape: f32[1,128], index: 8, kind: input, shape index: {}]   ;;  %s2686_s9 = inlined_call_operand.hbm [shape: f32[2,1,128], index: 9, kind: output, shape index: {}]  }
   0x1   :  { %15 = vsyncpa [#allocation6], 0 }
   0x2   :  { %16 = vsyncpa [#allocation4], 0  ;;  %s2097_s30 = smov [#allocation5]   ;;  %s2003_s13 = scalar_lea.hbm %s2682_s5, 12288 }
   0x3   :  { %s42_s10 = sshll.u32 %s2097_s30, 4  ;;  %p2004_p0 = scmp.ne.s32.totalorder %s2682_s5, %s2003_s13  ;;  %s43_s10 = int_to_ptr.vmem [resolvable:$true] %s42_s10 }
   0x4   :  { %p2007_p1 = scmp.lt.u32.totalorder %s2003_s13, %s2682_s5 }
   0x6   :  { %p2009_p2 = pnand %p2007_p1, %p2004_p0 }
   0x8   :  { %2012 = shalt.err (!%p2009_p2)
}
   0x9   :  { %s2013_s18 = scalar_lea.vmem %s43_s10, 12288  ;;  %p2018_p4 = scmp.lt.s32.totalorder %s43_s10, %s43_s10 }
   0xa   :  { %p2014_p3 = scmp.ne.s32.totalorder %s43_s10, %s2013_s18  ;;  %p2019_p5 = scmp.lt.s32.totalorder %s2013_s18, %s2013_s18 }
   0xc   :  { %p2020_p6 = por %p2019_p5, %p2018_p4 }
   0xe   :  { %p2021_p7 = pnand %p2020_p6, %p2014_p3 }
  0x10   :  { %2024 = shalt.err (!%p2021_p7)
}
  0x11   :  { %s2098_s19 = smov 256   ;;  %s2099_s20 = smov 16  }
  0x12   :  { %48 = dma.hbm_to_vmem [thread:$0]  %s2682_s5, 12288, %s43_s10, [#allocation6], %s2098_s19, %s2098_s19, %s2099_s20  }
  0x13   :  { %s2100_s23 = smov [#allocation2]   ;;  %s2025_s27 = scalar_lea.hbm %s2680_s3, 3072 }
  0x14   :  { %s28_s24 = sshll.u32 %s2100_s23, 4  ;;  %p2026_p8 = scmp.ne.s32.totalorder %s2680_s3, %s2025_s27  ;;  %s29_s24 = int_to_ptr.vmem [resolvable:$true] %s28_s24 }
  0x15   :  { %p2029_p9 = scmp.lt.u32.totalorder %s2025_s27, %s2680_s3 }
  0x17   :  { %p2031_p10 = pnand %p2029_p9, %p2026_p8 }
  0x19   :  { %2034 = shalt.err (!%p2031_p10)
}
  0x1a   :  { %s2035_s12 = scalar_lea.vmem %s29_s24, 3072  ;;  %p2040_p12 = scmp.lt.s32.totalorder %s29_s24, %s29_s24 }
  0x1b   :  { %p2036_p11 = scmp.ne.s32.totalorder %s29_s24, %s2035_s12  ;;  %p2041_p13 = scmp.lt.s32.totalorder %s2035_s12, %s2035_s12 }
  0x1d   :  { %p2042_p0 = por %p2041_p13, %p2040_p12 }
  0x1f   :  { %p2043_p1 = pnand %p2042_p0, %p2036_p11 }
  0x21   :  { %2046 = shalt.err (!%p2043_p1)
}
  0x22   :  { %s2101_s5 = smov 128   ;;  %s2102_s10 = smov 8  }
  0x23   :  { %34 = dma.hbm_to_vmem [thread:$0]  %s2680_s3, 3072, %s29_s24, [#allocation3], %s2101_s5, %s2101_s5, %s2102_s10  }
  0x24   :  { %s2103_s15 = smov [#allocation7]   ;;  %s2047_s19 = scalar_lea.hbm %s2684_s7, 4096 }
  0x25   :  { %s56_s16 = sshll.u32 %s2103_s15, 4  ;;  %p2048_p2 = scmp.ne.s32.totalorder %s2684_s7, %s2047_s19  ;;  %s57_s16 = int_to_ptr.vmem [resolvable:$true] %s56_s16 }
  0x26   :  { %p2051_p3 = scmp.lt.u32.totalorder %s2047_s19, %s2684_s7 }
  0x28   :  { %p2053_p4 = pnand %p2051_p3, %p2048_p2 }
  0x2a   :  { %2056 = shalt.err (!%p2053_p4)
}
  0x2b   :  { %s2057_s26 = scalar_lea.vmem %s57_s16, 4096  ;;  %p2062_p6 = scmp.lt.s32.totalorder %s57_s16, %s57_s16 }
  0x2c   :  { %p2058_p5 = scmp.ne.s32.totalorder %s57_s16, %s2057_s26  ;;  %p2063_p7 = scmp.lt.s32.totalorder %s2057_s26, %s2057_s26 }
  0x2e   :  { %p2064_p8 = por %p2063_p7, %p2062_p6 }
  0x30   :  { %p2065_p9 = pnand %p2064_p8, %p2058_p5 }
  0x32   :  { %2068 = shalt.err (!%p2065_p9)
}
  0x33   :  { %62 = dma.hbm_to_vmem [thread:$0]  %s2684_s7, 4096, %s57_s16, [#allocation6], %s2101_s5, %s2101_s5, %s2102_s10  }
  0x34   :  { %2091 = dma.done.wait [#allocation3], 3072  }
  0x35   :  { %2092 = vsyncadd [#allocation3], 4294964224 }
  0x36   :  { %2093 = dma.done.wait [#allocation6], 16384  }
  0x37   :  { %2094 = vsyncadd [#allocation6], 4294950912  ;;  %v74_v0 = vld [vmem:[%s2677_s0] sm:$0xff]  ;;  %v75_v1 = vld [vmem:[%s2677_s0 + $0x8] sm:$0xff]  ;;  %vm90_vm0 = vcmask 1040384   ;;  %vm260_vm1 = vcmask 1042432  }
  0x38   :  { %v76_v2 = vld [vmem:[%s2677_s0 + $0x10] sm:$0xff]  ;;  %v91_v3 = vrot.slane %v74_v0, 7  ;;  %v92_v4 = vrot.slane %v75_v1, 7  ;;  %v77_v6 = vld [vmem:[%s2677_s0 + $0x18] sm:$0xff]  ;;  %vm166_vm2 = vcmask 1045504   ;;  %vm123_vm3 = vcmask 1046528  }
  0x39   :  { %v94_v5 = vrot.slane %v76_v2, 7  ;;  %v96_v7 = vrot.slane %v77_v6, 7  ;;  %v227_v11 = vld [vmem:[%s2678_s1] sm:$0x7]  ;;  %v79_v23 = vld [vmem:[%s2677_s0 + $0x28] sm:$0xff]  ;;  %v80_v24 = vld [vmem:[%s2677_s0 + $0x30] sm:$0xff] }
  0x3a   :  { %v2212_v8 = vsel %vm90_vm0, %v91_v3, %v92_v4  ;;  %v2215_v9 = vsel %vm90_vm0, 0.0, %v91_v3  ;;  %1802 = vmatprep.subr.msk.mxu1 %vm260_vm1, %v227_v11  ;;  %v78_v22 = vld [vmem:[%s2677_s0 + $0x20] sm:$0xff]  ;;  %s2104_s19 = smov 2   ;;  %s2105_s21 = smov 1   ;;  %v99_v30 = vrot.slane %v79_v23, 7  ;;  %v101_v31 = vrot.slane %v80_v24, 7 }
  0x3b   :  { %v2218_v10 = vsel %vm90_vm0, %v92_v4, %v94_v5  ;;  %v167_v12 = vrot.slane %v2215_v9, 2  ;;  %v168_v13 = vrot.slane %v2212_v8, 2  ;;  %v124_v14 = vrot.slane %v2215_v9, 1  ;;  %1803 = vmatpush3.msk.msra.mxu1 %vm260_vm1, %v227_v11  ;;  %v81_v39 = vld [vmem:[%s2677_s0 + $0x38] sm:$0xff]  ;;  %s2111_s28 = smov [#allocation8]  }
  0x3c   :  { %v125_v15 = vrot.slane %v2212_v8, 1  ;;  %v170_v16 = vrot.slane %v2218_v10, 2  ;;  %v127_v17 = vrot.slane %v2218_v10, 1  ;;  %v2231_v18 = vsel %vm90_vm0, %v94_v5, %v96_v7  ;;  %s1723_s29 = sshll.u32 %s2111_s28, 4  ;;  %s1724_s29 = int_to_ptr.vmem [resolvable:$true] %s1723_s29 }
  0x3d   :  { %v117_v19 = vsel %vm90_vm0, %v96_v7, 0.0  ;;  %v169_v20 = vsel %vm166_vm2, %v167_v12, %v168_v13  ;;  %v129_v27 = vrot.slane %v2231_v18, 1  ;;  %v98_v29 = vrot.slane %v78_v22, 7  ;;  %s2069_s30 = scalar_lea.vmem %s1724_s29, 32  ;;  %p2074_p11 = scmp.lt.s32.totalorder %s1724_s29, %s1724_s29 }
  0x3e   :  { %v126_v21 = vsel %vm123_vm3, %v124_v14, %v125_v15  ;;  %185 = vrot.lane.b32.xlu1 %v169_v20, %s2104_s19  ;;  %v171_v25 = vsel %vm166_vm2, %v168_v13, %v170_v16  ;;  %v128_v26 = vsel %vm123_vm3, %v125_v15, %v127_v17  ;;  %v131_v28 = vrot.slane %v117_v19, 1  ;;  %p2070_p10 = scmp.ne.s32.totalorder %s1724_s29, %s2069_s30  ;;  %p2075_p12 = scmp.lt.s32.totalorder %s2069_s30, %s2069_s30 }
  0x3f   :  { %142 = vrot.lane.b32.xlu0 %v126_v21, %s2105_s21  ;;  %v172_v32 = vrot.slane %v2231_v18, 2  ;;  %v174_v33 = vrot.slane %v117_v19, 2  ;;  %v130_v35 = vsel %vm123_vm3, %v127_v17, %v129_v27  ;;  %v2257_v36 = vsel %vm90_vm0, %v98_v29, %v99_v30 }
  0x40   :  { %v132_v34 = vsel %vm123_vm3, %v129_v27, %v131_v28  ;;  %v2260_v37 = vsel %vm90_vm0, 0.0, %v98_v29  ;;  %v2263_v38 = vsel %vm90_vm0, %v99_v30, %v101_v31  ;;  %v134_v43 = vrot.slane %v2257_v36, 1  ;;  %p2076_p13 = por %p2075_p12, %p2074_p11 }
  0x41   :  { %v175_v40 = vsel %vm166_vm2, %v172_v32, %v174_v33  ;;  %v173_v41 = vsel %vm166_vm2, %v170_v16, %v172_v32  ;;  %v133_v42 = vrot.slane %v2260_v37, 1  ;;  %v136_v44 = vrot.slane %v2263_v38, 1  ;;  %v895_v32 = vld [vmem:[#allocation2 + $0x8] sm:$0xff]  ;;  %v896_v33 = vld [vmem:[#allocation2 + $0x10] sm:$0xff] }
  0x42   :  { %187 = vrot.lane.b32.xlu1 %v171_v25, %s2104_s19  ;;  %v103_v45 = vrot.slane %v81_v39, 7  ;;  %v176_v46 = vrot.slane %v2260_v37, 2  ;;  %v177_v49 = vrot.slane %v2257_v36, 2  ;;  %v179_v50 = vrot.slane %v2263_v38, 2  ;;  %v899_v39 = vld [vmem:[#allocation2 + $0x28] sm:$0xff]  ;;  %p2077_p0 = pnand %p2076_p13, %p2070_p10 }
  0x43   :  { %144 = vrot.lane.b32.xlu0 %v128_v26, %s2105_s21  ;;  %v135_v47 = vsel %vm123_vm3, %v133_v42, %v134_v43  ;;  %v137_v48 = vsel %vm123_vm3, %v134_v43, %v136_v44  ;;  %vm209_vm4 = vcmask 7168   ;;  %vm218_vm5 = vcmask 15360   ;;  %v901_v42 = vld [vmem:[#allocation2 + $0x38] sm:$0xff] }
  0x44   :  { %v104_v51 = vsel %vm90_vm0, %v101_v31, %v103_v45  ;;  %v118_v52 = vsel %vm90_vm0, %v103_v45, 0.0  ;;  %v178_v53 = vsel %vm166_vm2, %v176_v46, %v177_v49  ;;  %v180_v54 = vsel %vm166_vm2, %v177_v49, %v179_v50  ;;  %v894_v31 = vld [vmem:[#allocation2] sm:$0xff]  ;;  %v903_v45 = vld [vmem:[#allocation2 + $0x48] sm:$0xff] }
  0x45   :  { %v138_v55 = vrot.slane %v104_v51, 1  ;;  %v140_v56 = vrot.slane %v118_v52, 1  ;;  %v181_v59 = vrot.slane %v104_v51, 2  ;;  %v183_v60 = vrot.slane %v118_v52, 2 }
  0x46   :  { %148 = vrot.lane.b32.xlu1 %v132_v34, %s2105_s21  ;;  %vm235_vm6 = vcmask 23552   ;;  %v2106_v34 = vmov 0.0|0.0   ;;  %vm553_vm7 = vcmask 517120   ;;  %vm810_vm8 = vcmask 1042434  }
  0x47   :  { %146 = vrot.lane.b32.xlu0 %v130_v35, %s2105_s21  ;;  %v139_v57 = vsel %vm123_vm3, %v136_v44, %v138_v55  ;;  %v141_v58 = vsel %vm123_vm3, %v138_v55, %v140_v56  ;;  %v182_v61 = vsel %vm166_vm2, %v179_v50, %v181_v59  ;;  %v184_v62 = vsel %vm166_vm2, %v181_v59, %v183_v60  ;;  %v902_v44 = vld [vmem:[#allocation2 + $0x40] sm:$0xff] }
  0x48   :  { %1816 = vmatprep.subr.bf16.mxu1 %v2106_v34  ;;  %v1817_v35 = vpack.c.bf16 %v895_v32, %v894_v31  ;;  %v1829_v46 = vpack.c.bf16 %v903_v45, %v902_v44  ;;  %v906_v50 = vld [vmem:[#allocation2 + $0x60] sm:$0xff]  ;;  %v389_v60 = vlaneseq  ;;  %vm812_vm9 = vcmask 1043459  }
  0x49   :  { %v910_v56 = vld [vmem:[#allocation2 + $0x80] sm:$0xff]  ;;  %vm822_vm10 = vcmask 1041409   ;;  %vm814_vm11 = vcmask 1044484   ;;  %vm816_vm12 = vcmask 1045509   ;;  %vm818_vm13 = vcmask 1046534  }
  0x4a   :  { %191 = vrot.lane.b32.xlu1 %v175_v40, %s2104_s19  ;;  %vm820_vm14 = vcmask 1047559   ;;  %vm889_vm15 = vcmask 523264   ;;  %vm1110_vm1 = vcmask 1041408  }
  0x4b   :  { %189 = vrot.lane.b32.xlu0 %v173_v41, %s2104_s19  ;;  %v900_v41 = vld [vmem:[#allocation2 + $0x30] sm:$0xff] }
  0x4c   :  { %v1826_v43 = vpack.c.bf16 %v901_v42, %v900_v41 }
  0x4e   :  { %152 = vrot.lane.b32.xlu1 %v137_v48, %s2105_s21  ;;  %v905_v48 = vld [vmem:[#allocation2 + $0x58] sm:$0xff] }
  0x4f   :  { %150 = vrot.lane.b32.xlu0 %v135_v47, %s2105_s21  ;;  %v904_v47 = vld [vmem:[#allocation2 + $0x50] sm:$0xff] }
  0x50   :  { %v1832_v49 = vpack.c.bf16 %v905_v48, %v904_v47 }
  0x52   :  { %195 = vrot.lane.b32.xlu1 %v180_v54, %s2104_s19  ;;  %v909_v54 = vld [vmem:[#allocation2 + $0x78] sm:$0xff] }
  0x53   :  { %193 = vrot.lane.b32.xlu0 %v178_v53, %s2104_s19  ;;  %v908_v53 = vld [vmem:[#allocation2 + $0x70] sm:$0xff] }
  0x54   :  { %v1838_v55 = vpack.c.bf16 %v909_v54, %v908_v53 }
  0x56   :  { %156 = vrot.lane.b32.xlu1 %v141_v58, %s2105_s21  ;;  %v2107_v58 = vmov 1983009808  }
  0x57   :  { %154 = vrot.lane.b32.xlu0 %v139_v57, %s2105_s21  ;;  %v911_v57 = vld [vmem:[#allocation2 + $0x88] sm:$0xff]  ;;  %v387_v59 = vunpack.c.l.s4 %v2107_v58 }
  0x5a   :  { %199 = vrot.lane.b32.xlu1 %v184_v62, %s2104_s19  ;;  %v912_v62 = vld [vmem:[#allocation2 + $0x90] sm:$0xff] }
  0x5b   :  { %197 = vrot.lane.b32.xlu0 %v182_v61, %s2104_s19  ;;  %v1841_v61 = vpack.c.bf16 %v911_v57, %v910_v56 }
  0xb0   :  { %v186_v63 = vpop.permute.xlu1 %185 }
  0xb1   :  { %v143_v0 = vpop.permute.xlu0 %142 }
  0xb2   :  { %v210_v1 = vsel %vm209_vm4, %v2215_v9, %v143_v0  ;;  %v388_v0 = vunpack.c.0.s8 %v387_v59 }
  0xb3   :  { %v219_v2 = vsel %vm218_vm5, %v210_v1, %v186_v63  ;;  %v913_v63 = vld [vmem:[#allocation2 + $0x98] sm:$0xff]  ;;  %v2338_v1 = vshrl.u32 %v389_v60, 7 }
  0xb4   :  { %1804 = vmatprep.mubr.msk.f32.mxu1 %vm235_vm6, %v219_v2  ;;  %v188_v3 = vpop.permute.xlu1 %187  ;;  %v1844_v2 = vpack.c.bf16 %v913_v63, %v912_v62 }
  0xb5   :  { %v145_v4 = vpop.permute.xlu0 %144 }
  0xb6   :  { %v211_v5 = vsel %vm209_vm4, %v2212_v8, %v145_v4  ;;  %v914_v4 = vld [vmem:[#allocation2 + $0xa0] sm:$0xff] }
  0xb7   :  { %v220_v6 = vsel %vm218_vm5, %v211_v5, %v188_v3  ;;  %v2343_v3 = vld [vmem:[%s2679_s2] ss:$0 sm:$0xff]  ;;  %v915_v5 = vld [vmem:[#allocation2 + $0xa8] sm:$0xff]  ;;  %s2108_s2 = smov 64  }
  0xb8   :  { %1805 = vmatmul.mubr.msk.f32.vlgmr.msra.gmra.mrb[0].mxu1 %vm235_vm6, %v220_v6  ;;  %v149_v7 = vpop.permute.xlu1 %148 }
  0xb9   :  { %v147_v11 = vpop.permute.xlu0 %146  ;;  %v213_v12 = vsel %vm209_vm4, %v2231_v18, %v149_v7  ;;  %1818 = vmatpush1.bf16.msra.mxu1 %v1817_v35 }
  0xba   :  { %v212_v9 = vsel %vm209_vm4, %v2218_v10, %v147_v11  ;;  %1819 = vmatprep.subr.bf16.mxu1 %v2106_v34  ;;  %v2348_v11 = vsub.s32 %v388_v0, %v2338_v1 }
  0xbc   :  { %v192_v13 = vpop.permute.xlu1 %191 }
  0xbd   :  { %v190_v14 = vpop.permute.xlu0 %189  ;;  %v222_v15 = vsel %vm218_vm5, %v213_v12, %v192_v13 }
  0xbe   :  { %v221_v16 = vsel %vm218_vm5, %v212_v9, %v190_v14  ;;  %v1847_v9 = vpack.c.bf16 %v915_v5, %v914_v4  ;;  %v916_v14 = vld [vmem:[#allocation2 + $0xb0] sm:$0xff] }
  0xbf   :  { %1807 = vmatprep.mubr.msk.f32.mxu1 %vm235_vm6, %v221_v16 }
  0xc0   :  { %1808 = vmatmul.mubr.msk.f32.gmra.mrb[2].mxu1 %vm235_vm6, %v222_v15  ;;  %v153_v17 = vpop.permute.xlu1 %152  ;;  %v917_v15 = vld [vmem:[#allocation2 + $0xb8] sm:$0xff] }
  0xc1   :  { %v151_v8 = vpop.permute.xlu0 %150  ;;  %v215_v18 = vsel %vm209_vm4, %v2257_v36, %v153_v17  ;;  %v897_v36 = vld [vmem:[#allocation2 + $0x18] sm:$0xff] }
  0xc2   :  { %v214_v19 = vsel %vm209_vm4, %v2260_v37, %v151_v8  ;;  %v1820_v37 = vpack.c.bf16 %v897_v36, %v896_v33 }
  0xc4   :  { %v196_v10 = vpop.permute.xlu1 %195  ;;  %1821 = vmatpush1.bf16.msra.mxu1 %v1820_v37 }
  0xc5   :  { %v194_v20 = vpop.permute.xlu0 %193  ;;  %v224_v22 = vsel %vm218_vm5, %v215_v18, %v196_v10  ;;  %1822 = vmatprep.subr.bf16.mxu1 %v2106_v34  ;;  %v1850_v18 = vpack.c.bf16 %v917_v15, %v916_v14 }
  0xc6   :  { %v223_v21 = vsel %vm218_vm5, %v214_v19, %v194_v20 }
  0xc7   :  { %1810 = vmatprep.mubr.msk.f32.mxu1 %vm235_vm6, %v223_v21 }
  0xc8   :  { %1811 = vmatmul.mubr.msk.f32.gmra.mrb[4].mxu1 %vm235_vm6, %v224_v22  ;;  %v157_v24 = vpop.permute.xlu1 %156 }
  0xc9   :  { %v155_v23 = vpop.permute.xlu0 %154  ;;  %v217_v26 = vsel %vm209_vm4, %v104_v51, %v157_v24  ;;  %v907_v51 = vld [vmem:[#allocation2 + $0x68] sm:$0xff] }
  0xca   :  { %v216_v25 = vsel %vm209_vm4, %v2263_v38, %v155_v23  ;;  %v898_v38 = vld [vmem:[#allocation2 + $0x20] sm:$0xff]  ;;  %v1835_v52 = vpack.c.bf16 %v907_v51, %v906_v50  ;;  %vm2637_vm4 = vmneg %vm90_vm0 }
  0xcb   :  { %v1823_v40 = vpack.c.bf16 %v899_v39, %v898_v38 }
  0xcc   :  { %v200_v28 = vpop.permute.xlu1 %199 }
  0xcd   :  { %v198_v27 = vpop.permute.xlu0 %197  ;;  %v226_v30 = vsel %vm218_vm5, %v217_v26, %v200_v28  ;;  %1824 = vmatpush1.bf16.msra.mxu1 %v1823_v40 }
  0xce   :  { %v225_v29 = vsel %vm218_vm5, %v216_v25, %v198_v27  ;;  %1825 = vmatprep.subr.bf16.mxu1 %v2106_v34 }
  0xcf   :  { %1813 = vmatprep.mubr.msk.f32.mxu1 %vm235_vm6, %v225_v29 }
  0xd0   :  { %1814 = vmatmul.mubr.msk.f32.gmra.mrb[6].mxu1 %vm235_vm6, %v226_v30 }
  0xd1   :  { %1827 = vmatpush1.bf16.msra.mxu1 %v1826_v43 }
  0xd2   :  { %1828 = vmatprep.subr.bf16.mxu1 %v2106_v34 }
  0xd5   :  { %1830 = vmatpush1.bf16.msra.mxu1 %v1829_v46 }
  0xd6   :  { %1831 = vmatprep.subr.bf16.mxu1 %v2106_v34 }
  0xd9   :  { %1833 = vmatpush1.bf16.msra.mxu1 %v1832_v49 }
  0xda   :  { %1834 = vmatprep.subr.bf16.mxu1 %v2106_v34 }
  0xdd   :  { %1836 = vmatpush1.bf16.msra.mxu1 %v1835_v52 }
  0xde   :  { %1837 = vmatprep.subr.bf16.mxu1 %v2106_v34 }
  0xe1   :  { %1839 = vmatpush1.bf16.msra.mxu1 %v1838_v55 }
  0xe2   :  { %1840 = vmatprep.subr.bf16.mxu1 %v2106_v34 }
  0xe5   :  { %1842 = vmatpush1.bf16.msra.mxu1 %v1841_v61 }
  0xe6   :  { %1843 = vmatprep.subr.bf16.mxu1 %v2106_v34 }
  0xe9   :  { %1845 = vmatpush1.bf16.msra.mxu1 %v1844_v2 }
  0xea   :  { %1846 = vmatprep.subr.bf16.mxu1 %v2106_v34 }
  0xed   :  { %1848 = vmatpush1.bf16.msra.mxu1 %v1847_v9 }
  0xee   :  { %1849 = vmatprep.subr.bf16.mxu1 %v2106_v34 }
  0xf1   :  { %1851 = vmatpush1.bf16.msra.mxu1 %v1850_v18 }
 0x18b   :  { %v1806_v6 = vpop.f32.mrb[0].mxu1 }
 0x18c   :  { %v336_v7 = vadd.f32 %v1806_v6, %v2343_v3  ;;  %v330_v12 = vpop.f32.mrb[1].mxu1 }
 0x18d   :  { %v331_v13 = vadd.f32 %v2343_v3, %v330_v12 }
 0x18e   :  { %v370_v16 = vmax.f32 %v336_v7, 0.0 }
 0x18f   :  { %v369_v8 = vmax.f32 %v331_v13, 0.0 }
 0x190   :  { %v402_v17 = vcombine.high %v370_v16, %v370_v16  ;;  %v409_v19 = vrot.slane %v370_v16, %v2348_v11 }
 0x191   :  { %v385_v20 = vcombine.high %v369_v8, %v369_v8  ;;  %v392_v10 = vrot.slane %v369_v8, %v2348_v11 }
 0x192   :  { %v416_v21 = vrot.slane %v402_v17, %v2348_v11  ;;  %v417_v22 = vcombine.high %v409_v19, %v409_v19  ;;  %v582_v23 = vsel %vm553_vm7, %v409_v19, -inf }
 0x193   :  { %v583_v24 = vrot.slane %v582_v23, 4  ;;  %v399_v25 = vrot.slane %v385_v20, %v2348_v11  ;;  %v400_v26 = vcombine.high %v392_v10, %v392_v10  ;;  %v554_v27 = vsel %vm553_vm7, %v392_v10, -inf  ;;  %v1809_v28 = vpop.f32.mrb[2].mxu1 }
 0x194   :  { %v418_v29 = vcombine.high %v416_v21, %v416_v21  ;;  %v589_v30 = vsel %vm553_vm7, %v417_v22, -inf  ;;  %v596_v31 = vsel %vm553_vm7, %v416_v21, -inf  ;;  %v555_v32 = vrot.slane %v554_v27, 4  ;;  %v340_v33 = vpop.f32.mrb[3].mxu1 }
 0x195   :  { %v584_v34 = vmax.f32 %v582_v23, %v583_v24  ;;  %v590_v35 = vrot.slane %v589_v30, 4  ;;  %v597_v36 = vrot.slane %v596_v31, 4  ;;  %v401_v37 = vcombine.high %v399_v25, %v399_v25 }
 0x196   :  { %v603_v38 = vsel %vm553_vm7, %v418_v29, -inf  ;;  %v556_v39 = vmax.f32 %v554_v27, %v555_v32  ;;  %v561_v40 = vsel %vm553_vm7, %v400_v26, -inf  ;;  %v568_v41 = vsel %vm553_vm7, %v399_v25, -inf }
 0x197   :  { %v585_v42 = vrot.slane %v584_v34, 2  ;;  %v591_v43 = vmax.f32 %v589_v30, %v590_v35  ;;  %v598_v44 = vmax.f32 %v596_v31, %v597_v36  ;;  %v604_v45 = vrot.slane %v603_v38, 4 }
 0x198   :  { %v557_v46 = vrot.slane %v556_v39, 2  ;;  %v562_v47 = vrot.slane %v561_v40, 4  ;;  %v569_v48 = vrot.slane %v568_v41, 4  ;;  %v575_v49 = vsel %vm553_vm7, %v401_v37, -inf }
 0x199   :  { %v586_v50 = vmax.f32 %v584_v34, %v585_v42  ;;  %v592_v51 = vrot.slane %v591_v43, 2  ;;  %v599_v52 = vrot.slane %v598_v44, 2  ;;  %v605_v53 = vmax.f32 %v603_v38, %v604_v45 }
 0x19a   :  { %v558_v54 = vmax.f32 %v556_v39, %v557_v46  ;;  %v563_v55 = vmax.f32 %v561_v40, %v562_v47  ;;  %v570_v56 = vmax.f32 %v568_v41, %v569_v48  ;;  %v576_v57 = vrot.slane %v575_v49, 4 }
 0x19b   :  { %v587_v58 = vrot.slane %v586_v50, 1  ;;  %v593_v59 = vmax.f32 %v591_v43, %v592_v51  ;;  %v600_v60 = vmax.f32 %v598_v44, %v599_v52  ;;  %v606_v61 = vrot.slane %v605_v53, 2  ;;  %v1812_v62 = vpop.f32.mrb[4].mxu1 }
 0x19c   :  { %v559_v63 = vrot.slane %v558_v54, 1  ;;  %v564_v0 = vrot.slane %v563_v55, 2  ;;  %v571_v2 = vrot.slane %v570_v56, 2  ;;  %v577_v4 = vmax.f32 %v575_v49, %v576_v57  ;;  %v350_v5 = vpop.f32.mrb[5].mxu1 }
 0x19d   :  { %v2365_v6 = vmax.f32 %v586_v50, %v587_v58  ;;  %v594_v7 = vrot.slane %v593_v59, 1  ;;  %v601_v12 = vrot.slane %v600_v60, 1  ;;  %v607_v9 = vmax.f32 %v605_v53, %v606_v61 }
 0x19e   :  { %v560_v13 = vmax.f32 %v558_v54, %v559_v63  ;;  %v565_v14 = vmax.f32 %v563_v55, %v564_v0  ;;  %v572_v15 = vmax.f32 %v570_v56, %v571_v2  ;;  %v578_v16 = vrot.slane %v577_v4, 2 }
 0x19f   :  { %v2367_v8 = vmax.f32 %v593_v59, %v594_v7  ;;  %v2369_v17 = vmax.f32 %v600_v60, %v601_v12  ;;  %v608_v19 = vrot.slane %v607_v9, 1  ;;  %v346_v18 = vadd.f32 %v1809_v28, %v2343_v3 }
 0x1a0   :  { %v566_v20 = vrot.slane %v565_v14, 1  ;;  %v573_v10 = vrot.slane %v572_v15, 1  ;;  %v579_v21 = vmax.f32 %v577_v4, %v578_v16  ;;  %v341_v22 = vadd.f32 %v2343_v3, %v340_v33 }
 0x1a1   :  { %v2373_v23 = vmax.f32 %v607_v9, %v608_v19  ;;  %v372_v24 = vmax.f32 %v346_v18, 0.0  ;;  %v356_v25 = vadd.f32 %v1812_v62, %v2343_v3  ;;  %v351_v26 = vadd.f32 %v2343_v3, %v350_v5 }
 0x1a2   :  { %v567_v27 = vmax.f32 %v565_v14, %v566_v20  ;;  %v574_v29 = vmax.f32 %v572_v15, %v573_v10  ;;  %v580_v30 = vrot.slane %v579_v21, 1  ;;  %v371_v31 = vmax.f32 %v341_v22, 0.0 }
 0x1a3   :  { %v436_v32 = vcombine.high %v372_v24, %v372_v24  ;;  %v443_v34 = vrot.slane %v372_v24, %v2348_v11  ;;  %v2378_v28 = vmax.f32 %v356_v25, 0.0  ;;  %v2380_v35 = vmax.f32 %v351_v26, 0.0  ;;  %v2382_v36 = vpop.f32.mrb[6].mxu1 }
 0x1a4   :  { %v2384_v33 = vmax.f32 %v579_v21, %v580_v30  ;;  %v811_v37 = vsel %vm810_vm8, %v567_v27, %v560_v13  ;;  %v419_v38 = vcombine.high %v371_v31, %v371_v31  ;;  %v426_v39 = vrot.slane %v371_v31, %v2348_v11  ;;  %v2388_v40 = vpop.f32.mrb[7].mxu1 }
 0x1a5   :  { %v2391_v41 = vsel %vm812_vm9, %v574_v29, %v811_v37  ;;  %v450_v42 = vrot.slane %v436_v32, %v2348_v11  ;;  %v451_v43 = vcombine.high %v443_v34, %v443_v34  ;;  %v638_v44 = vsel %vm553_vm7, %v443_v34, -inf }
 0x1a6   :  { %v639_v45 = vrot.slane %v638_v44, 4  ;;  %v433_v46 = vrot.slane %v419_v38, %v2348_v11  ;;  %v434_v47 = vcombine.high %v426_v39, %v426_v39  ;;  %v610_v48 = vsel %vm553_vm7, %v426_v39, -inf }
 0x1a7   :  { %v452_v49 = vcombine.high %v450_v42, %v450_v42  ;;  %v645_v50 = vsel %vm553_vm7, %v451_v43, -inf  ;;  %v652_v51 = vsel %vm553_vm7, %v450_v42, -inf  ;;  %v611_v52 = vrot.slane %v610_v48, 4 }
 0x1a8   :  { %v640_v53 = vmax.f32 %v638_v44, %v639_v45  ;;  %v646_v54 = vrot.slane %v645_v50, 4  ;;  %v653_v55 = vrot.slane %v652_v51, 4  ;;  %v435_v56 = vcombine.high %v433_v46, %v433_v46 }
 0x1a9   :  { %v659_v57 = vsel %vm553_vm7, %v452_v49, -inf  ;;  %v612_v58 = vmax.f32 %v610_v48, %v611_v52  ;;  %v617_v59 = vsel %vm553_vm7, %v434_v47, -inf  ;;  %v624_v60 = vsel %vm553_vm7, %v433_v46, -inf }
 0x1aa   :  { %v641_v61 = vrot.slane %v640_v53, 2  ;;  %v647_v62 = vmax.f32 %v645_v50, %v646_v54  ;;  %v654_v63 = vmax.f32 %v652_v51, %v653_v55  ;;  %v660_v0 = vrot.slane %v659_v57, 4 }
 0x1ab   :  { %v613_v2 = vrot.slane %v612_v58, 2  ;;  %v618_v4 = vrot.slane %v617_v59, 4  ;;  %v625_v5 = vrot.slane %v624_v60, 4  ;;  %v631_v7 = vsel %vm553_vm7, %v435_v56, -inf }
 0x1ac   :  { %v642_v12 = vmax.f32 %v640_v53, %v641_v61  ;;  %v648_v9 = vrot.slane %v647_v62, 2  ;;  %v655_v13 = vrot.slane %v654_v63, 2  ;;  %v2403_v14 = vmax.f32 %v659_v57, %v660_v0 }
 0x1ad   :  { %v614_v15 = vmax.f32 %v612_v58, %v613_v2  ;;  %v619_v16 = vmax.f32 %v617_v59, %v618_v4  ;;  %v626_v19 = vmax.f32 %v624_v60, %v625_v5  ;;  %v632_v18 = vrot.slane %v631_v7, 4 }
 0x1ae   :  { %v643_v20 = vrot.slane %v642_v12, 1  ;;  %v649_v10 = vmax.f32 %v647_v62, %v648_v9  ;;  %v656_v21 = vmax.f32 %v654_v63, %v655_v13  ;;  %v662_v22 = vrot.slane %v2403_v14, 2 }
 0x1af   :  { %v615_v24 = vrot.slane %v614_v15, 1  ;;  %v620_v25 = vrot.slane %v619_v16, 2  ;;  %v627_v26 = vrot.slane %v626_v19, 2  ;;  %v633_v27 = vmax.f32 %v631_v7, %v632_v18 }
 0x1b0   :  { %v2406_v29 = vmax.f32 %v642_v12, %v643_v20  ;;  %v650_v30 = vrot.slane %v649_v10, 1  ;;  %v657_v31 = vrot.slane %v656_v21, 1  ;;  %v470_v32 = vcombine.high %v2378_v28, %v2378_v28 }
 0x1b1   :  { %v616_v34 = vmax.f32 %v614_v15, %v615_v24  ;;  %v621_v37 = vmax.f32 %v619_v16, %v620_v25  ;;  %v628_v38 = vmax.f32 %v626_v19, %v627_v26  ;;  %v634_v39 = vrot.slane %v633_v27, 2 }
 0x1b2   :  { %v2410_v42 = vmax.f32 %v649_v10, %v650_v30  ;;  %v2412_v43 = vmax.f32 %v656_v21, %v657_v31  ;;  %v477_v44 = vrot.slane %v2378_v28, %v2348_v11  ;;  %v484_v45 = vrot.slane %v470_v32, %v2348_v11 }
 0x1b3   :  { %v622_v46 = vrot.slane %v621_v37, 1  ;;  %v629_v47 = vrot.slane %v628_v38, 1  ;;  %v635_v48 = vmax.f32 %v633_v27, %v634_v39  ;;  %v823_v49 = vsel %vm822_vm10, %v616_v34, %v2373_v23 }
 0x1b4   :  { %v485_v50 = vcombine.high %v477_v44, %v477_v44  ;;  %v486_v51 = vcombine.high %v484_v45, %v484_v45  ;;  %v694_v52 = vsel %vm553_vm7, %v477_v44, -inf  ;;  %v708_v53 = vsel %vm553_vm7, %v484_v45, -inf }
 0x1b5   :  { %v623_v54 = vmax.f32 %v621_v37, %v622_v46  ;;  %v630_v55 = vmax.f32 %v628_v38, %v629_v47  ;;  %v636_v56 = vrot.slane %v635_v48, 1  ;;  %v695_v57 = vrot.slane %v694_v52, 4 }
 0x1b6   :  { %v701_v28 = vsel %vm553_vm7, %v485_v50, -inf  ;;  %v709_v58 = vrot.slane %v708_v53, 4  ;;  %v715_v59 = vsel %vm553_vm7, %v486_v51, -inf  ;;  %v453_v60 = vcombine.high %v2380_v35, %v2380_v35 }
 0x1b7   :  { %v2425_v61 = vmax.f32 %v635_v48, %v636_v56  ;;  %v824_v23 = vsel %vm810_vm8, %v623_v54, %v823_v49  ;;  %v696_v62 = vmax.f32 %v694_v52, %v695_v57  ;;  %v702_v63 = vrot.slane %v701_v28, 4 }
 0x1b8   :  { %v2429_v0 = vsel %vm812_vm9, %v630_v55, %v824_v23  ;;  %v710_v2 = vmax.f32 %v708_v53, %v709_v58  ;;  %v716_v4 = vrot.slane %v715_v59, 4  ;;  %v460_v5 = vrot.slane %v2380_v35, %v2348_v11 }
 0x1b9   :  { %v697_v7 = vrot.slane %v696_v62, 2  ;;  %v703_v12 = vmax.f32 %v701_v28, %v702_v63  ;;  %v467_v9 = vrot.slane %v453_v60, %v2348_v11  ;;  %v366_v13 = vadd.f32 %v2382_v36, %v2343_v3 }
 0x1ba   :  { %v711_v15 = vrot.slane %v710_v2, 2  ;;  %v717_v16 = vmax.f32 %v715_v59, %v716_v4  ;;  %v468_v19 = vcombine.high %v460_v5, %v460_v5  ;;  %v666_v18 = vsel %vm553_vm7, %v460_v5, -inf }
 0x1bb   :  { %v698_v20 = vmax.f32 %v696_v62, %v697_v7  ;;  %v704_v10 = vrot.slane %v703_v12, 2  ;;  %v469_v21 = vcombine.high %v467_v9, %v467_v9  ;;  %v667_v24 = vrot.slane %v666_v18, 4 }
 0x1bc   :  { %v712_v25 = vmax.f32 %v710_v2, %v711_v15  ;;  %v718_v26 = vrot.slane %v717_v16, 2  ;;  %v673_v35 = vsel %vm553_vm7, %v468_v19, -inf  ;;  %v680_v27 = vsel %vm553_vm7, %v467_v9, -inf }
 0x1bd   :  { %v699_v30 = vrot.slane %v698_v20, 1  ;;  %v705_v31 = vmax.f32 %v703_v12, %v704_v10  ;;  %v668_v32 = vmax.f32 %v666_v18, %v667_v24  ;;  %v674_v34 = vrot.slane %v673_v35, 4 }
 0x1be   :  { %v713_v36 = vrot.slane %v712_v25, 1  ;;  %v719_v37 = vmax.f32 %v717_v16, %v718_v26  ;;  %v681_v38 = vrot.slane %v680_v27, 4  ;;  %v687_v39 = vsel %vm553_vm7, %v469_v21, -inf }
 0x1bf   :  { %v2440_v44 = vmax.f32 %v698_v20, %v699_v30  ;;  %v706_v45 = vrot.slane %v705_v31, 1  ;;  %v669_v46 = vrot.slane %v668_v32, 2  ;;  %v675_v47 = vmax.f32 %v673_v35, %v674_v34 }
 0x1c0   :  { %v2442_v48 = vmax.f32 %v712_v25, %v713_v36  ;;  %v720_v49 = vrot.slane %v719_v37, 1  ;;  %v682_v50 = vmax.f32 %v680_v27, %v681_v38  ;;  %v688_v51 = vrot.slane %v687_v39, 4 }
 0x1c1   :  { %v2444_v52 = vmax.f32 %v705_v31, %v706_v45  ;;  %v670_v53 = vmax.f32 %v668_v32, %v669_v46  ;;  %v676_v54 = vrot.slane %v675_v47, 2  ;;  %v376_v55 = vmax.f32 %v366_v13, 0.0 }
 0x1c2   :  { %v2446_v56 = vmax.f32 %v719_v37, %v720_v49  ;;  %v683_v57 = vrot.slane %v682_v50, 2  ;;  %v689_v28 = vmax.f32 %v687_v39, %v688_v51  ;;  %v361_v58 = vadd.f32 %v2343_v3, %v2388_v40 }
 0x1c3   :  { %v671_v59 = vrot.slane %v670_v53, 1  ;;  %v677_v60 = vmax.f32 %v675_v47, %v676_v54  ;;  %v504_v23 = vcombine.high %v376_v55, %v376_v55  ;;  %v511_v62 = vrot.slane %v376_v55, %v2348_v11 }
 0x1c4   :  { %v684_v63 = vmax.f32 %v682_v50, %v683_v57  ;;  %v690_v2 = vrot.slane %v689_v28, 2  ;;  %v375_v4 = vmax.f32 %v361_v58, 0.0  ;;  %v663_v5 = vmax.f32 %v2403_v14, %v662_v22 }
 0x1c5   :  { %v672_v7 = vmax.f32 %v670_v53, %v671_v59  ;;  %v678_v12 = vrot.slane %v677_v60, 1  ;;  %v518_v9 = vrot.slane %v504_v23, %v2348_v11  ;;  %v519_v13 = vcombine.high %v511_v62, %v511_v62 }
 0x1c6   :  { %v685_v15 = vrot.slane %v684_v63, 1  ;;  %v691_v3 = vmax.f32 %v689_v28, %v690_v2  ;;  %v750_v40 = vsel %vm553_vm7, %v511_v62, -inf  ;;  %v487_v16 = vcombine.high %v375_v4, %v375_v4 }
 0x1c7   :  { %v679_v19 = vmax.f32 %v677_v60, %v678_v12  ;;  %v520_v18 = vcombine.high %v518_v9, %v518_v9  ;;  %v751_v20 = vrot.slane %v750_v40, 4  ;;  %v757_v10 = vsel %vm553_vm7, %v519_v13, -inf }
 0x1c8   :  { %v686_v21 = vmax.f32 %v684_v63, %v685_v15  ;;  %v692_v24 = vrot.slane %v691_v3, 1  ;;  %v758_v25 = vrot.slane %v757_v10, 4  ;;  %v764_v14 = vsel %vm553_vm7, %v518_v9, -inf }
 0x1c9   :  { %v830_v22 = vsel %vm810_vm8, %v679_v19, %v672_v7  ;;  %v752_v26 = vmax.f32 %v750_v40, %v751_v20  ;;  %v765_v35 = vrot.slane %v764_v14, 4  ;;  %v771_v27 = vsel %vm553_vm7, %v520_v18, -inf }
 0x1ca   :  { %v2460_v30 = vmax.f32 %v691_v3, %v692_v24  ;;  %v2463_v31 = vsel %vm812_vm9, %v686_v21, %v830_v22  ;;  %v759_v32 = vmax.f32 %v757_v10, %v758_v25  ;;  %v772_v34 = vrot.slane %v771_v27, 4 }
 0x1cb   :  { %v753_v36 = vrot.slane %v752_v26, 2  ;;  %v766_v37 = vmax.f32 %v764_v14, %v765_v35  ;;  %v494_v38 = vrot.slane %v375_v4, %v2348_v11  ;;  %v501_v39 = vrot.slane %v487_v16, %v2348_v11 }
 0x1cc   :  { %v760_v45 = vrot.slane %v759_v32, 2  ;;  %v773_v46 = vmax.f32 %v771_v27, %v772_v34  ;;  %v664_v47 = vrot.slane %v663_v5, 1  ;;  %v826_v49 = vsel %vm814_vm11, %v2425_v61, %v2429_v0 }
 0x1cd   :  { %v754_v50 = vmax.f32 %v752_v26, %v753_v36  ;;  %v767_v51 = vrot.slane %v766_v37, 2  ;;  %v502_v53 = vcombine.high %v494_v38, %v494_v38  ;;  %v503_v54 = vcombine.high %v501_v39, %v501_v39 }
 0x1ce   :  { %v761_v55 = vmax.f32 %v759_v32, %v760_v45  ;;  %v774_v57 = vrot.slane %v773_v46, 2  ;;  %v722_v28 = vsel %vm553_vm7, %v494_v38, -inf  ;;  %v736_v58 = vsel %vm553_vm7, %v501_v39, -inf }
 0x1cf   :  { %v755_v59 = vrot.slane %v754_v50, 1  ;;  %v768_v60 = vmax.f32 %v766_v37, %v767_v51  ;;  %v723_v23 = vrot.slane %v722_v28, 4  ;;  %v729_v62 = vsel %vm553_vm7, %v502_v53, -inf }
 0x1d0   :  { %v762_v63 = vrot.slane %v761_v55, 1  ;;  %v730_v2 = vrot.slane %v729_v62, 4  ;;  %v737_v4 = vrot.slane %v736_v58, 4  ;;  %v743_v61 = vsel %vm553_vm7, %v503_v54, -inf }
 0x1d1   :  { %v2474_v0 = vmax.f32 %v754_v50, %v755_v59  ;;  %v769_v7 = vrot.slane %v768_v60, 1  ;;  %v724_v12 = vmax.f32 %v722_v28, %v723_v23  ;;  %v744_v9 = vrot.slane %v743_v61, 4 }
 0x1d2   :  { %v2476_v13 = vmax.f32 %v761_v55, %v762_v63  ;;  %v731_v15 = vmax.f32 %v729_v62, %v730_v2  ;;  %v738_v3 = vmax.f32 %v736_v58, %v737_v4  ;;  %v665_v40 = vmax.f32 %v663_v5, %v664_v47  ;;  %v1280_v62 = vld [vmem:[#allocation5 + $0x8] sm:$0xff]  ;;  %v1282_v63 = vld [vmem:[#allocation5 + $0x18] sm:$0xff]  ;;  %v1279_v2 = vld [vmem:[#allocation5] sm:$0xff] }
 0x1d3   :  { %v2478_v16 = vmax.f32 %v768_v60, %v769_v7  ;;  %v725_v19 = vrot.slane %v724_v12, 2  ;;  %v745_v18 = vmax.f32 %v743_v61, %v744_v9  ;;  %v827_v20 = vsel %vm816_vm12, %v2406_v29, %v826_v49  ;;  %v1284_v9 = vld [vmem:[#allocation5 + $0x28] sm:$0xff] }
 0x1d4   :  { %v732_v10 = vrot.slane %v731_v15, 2  ;;  %v739_v21 = vrot.slane %v738_v3, 2  ;;  %v828_v24 = vsel %vm818_vm13, %v2410_v42, %v827_v20  ;;  %v851_v25 = vsel %vm90_vm0, %v665_v40, 0.0  ;;  %v1283_v40 = vld [vmem:[#allocation5 + $0x20] sm:$0xff]  ;;  %v1288_v20 = vld [vmem:[#allocation5 + $0x48] sm:$0xff] }
 0x1d5   :  { %v726_v14 = vmax.f32 %v724_v12, %v725_v19  ;;  %v746_v22 = vrot.slane %v745_v18, 2  ;;  %v2487_v5 = vsel %vm820_vm14, %v2412_v43, %v828_v24  ;;  %v860_v26 = vrot.slane %v851_v25, 1  ;;  %v1281_v12 = vld [vmem:[#allocation5 + $0x10] sm:$0xff] }
 0x1d6   :  { %v733_v35 = vmax.f32 %v731_v15, %v732_v10  ;;  %v740_v27 = vmax.f32 %v738_v3, %v739_v21  ;;  %v858_v32 = vrot.slane %v2487_v5, 1  ;;  %v815_v29 = vsel %vm814_vm11, %v2384_v33, %v2391_v41  ;;  %v1286_v15 = vld [vmem:[#allocation5 + $0x38] sm:$0xff]  ;;  %v1285_v19 = vld [vmem:[#allocation5 + $0x30] sm:$0xff] }
 0x1d7   :  { %v727_v34 = vrot.slane %v726_v14, 1  ;;  %v747_v36 = vmax.f32 %v745_v18, %v746_v22  ;;  %v817_v42 = vsel %vm816_vm12, %v2365_v6, %v815_v29  ;;  %v880_v37 = vrot.slane %v2487_v5, 2  ;;  %v1290_v10 = vld [vmem:[#allocation5 + $0x58] sm:$0xff] }
 0x1d8   :  { %v734_v38 = vrot.slane %v733_v35, 1  ;;  %v741_v39 = vrot.slane %v740_v27, 1  ;;  %v861_v43 = vsel %vm123_vm3, %v858_v32, %v860_v26  ;;  %v819_v45 = vsel %vm818_vm13, %v2367_v8, %v817_v42  ;;  %v1294_v29 = vld [vmem:[#allocation5 + $0x78] sm:$0xff]  ;;  %v1291_v42 = vld [vmem:[#allocation5 + $0x60] sm:$0xff] }
 0x1d9   :  { %v728_v47 = vmax.f32 %v726_v14, %v727_v34  ;;  %v748_v49 = vrot.slane %v747_v36, 1  ;;  %869 = vrot.lane.b32.xlu1 %v861_v43, %s2108_s2  ;;  %v821_v33 = vsel %vm820_vm14, %v2369_v17, %v819_v45  ;;  %v775_v41 = vmax.f32 %v773_v46, %v774_v57 }
 0x1da   :  { %v735_v50 = vmax.f32 %v733_v35, %v734_v38  ;;  %v742_v6 = vmax.f32 %v740_v27, %v741_v39  ;;  %v2503_v51 = vsel %vm90_vm0, 0.0, %v821_v33  ;;  %v832_v53 = vsel %vm814_vm11, %v2460_v30, %v2463_v31  ;;  %v1287_v35 = vld [vmem:[#allocation5 + $0x40] sm:$0xff]  ;;  %v1289_v27 = vld [vmem:[#allocation5 + $0x50] sm:$0xff]  ;;  %v1296_v38 = vld [vmem:[#allocation5 + $0x88] sm:$0xff] }
 0x1db   :  { %v749_v54 = vmax.f32 %v747_v36, %v748_v49  ;;  %v836_v8 = vsel %vm822_vm10, %v728_v47, %v2446_v56  ;;  %v857_v55 = vrot.slane %v2503_v51, 1  ;;  %v879_v28 = vrot.slane %v2503_v51, 2  ;;  %v1298_v39 = vld [vmem:[#allocation5 + $0x98] sm:$0xff]  ;;  %v1295_v47 = vld [vmem:[#allocation5 + $0x80] sm:$0xff]  ;;  %v1297_v49 = vld [vmem:[#allocation5 + $0x90] sm:$0xff] }
 0x1dc   :  { %v837_v17 = vsel %vm810_vm8, %v735_v50, %v836_v8  ;;  %v776_v46 = vrot.slane %v775_v41, 1  ;;  %v833_v57 = vsel %vm816_vm12, %v2440_v44, %v832_v53  ;;  %v882_v58 = vrot.slane %v851_v25, 2  ;;  %v1300_v33 = vld [vmem:[#allocation5 + $0xa8] sm:$0xff]  ;;  %v1299_v53 = vld [vmem:[#allocation5 + $0xa0] sm:$0xff] }
 0x1dd   :  { %v838_v59 = vsel %vm812_vm9, %v742_v6, %v837_v17  ;;  %v859_v60 = vsel %vm123_vm3, %v857_v55, %v858_v32  ;;  %v881_v30 = vsel %vm166_vm2, %v879_v28, %v880_v37  ;;  %v834_v56 = vsel %vm818_vm13, %v2444_v52, %v833_v57  ;;  %v1292_v32 = vld [vmem:[#allocation5 + $0x68] sm:$0xff]  ;;  %v1306_v55 = vld [vmem:[#allocation5 + $0xd8] sm:$0xff]  ;;  %v1305_v57 = vld [vmem:[#allocation5 + $0xd0] sm:$0xff] }
 0x1de   :  { %867 = vrot.lane.b32.xlu0 %v859_v60, %s2108_s2  ;;  %1747 = vmatprep.mubr.msk.f32.mxu1 %vm889_vm15, %v881_v30  ;;  %v777_v31 = vmax.f32 %v775_v41, %v776_v46  ;;  %v839_v23 = vsel %vm814_vm11, %v749_v54, %v838_v59  ;;  %v835_v44 = vsel %vm820_vm14, %v2442_v48, %v834_v56  ;;  %v1302_v41 = vld [vmem:[#allocation5 + $0xb8] sm:$0xff]  ;;  %v1301_v54 = vld [vmem:[#allocation5 + $0xb0] sm:$0xff]  ;;  %v1304_v8 = vld [vmem:[#allocation5 + $0xc8] sm:$0xff] }
 0x1df   :  { %v840_v4 = vsel %vm816_vm12, %v2474_v0, %v839_v23  ;;  %v2528_v61 = vsel %vm90_vm0, 0.0, %v835_v44  ;;  %v2531_v52 = vsel %vm166_vm2, %v880_v37, %v882_v58  ;;  %v1852_v7 = vpack.c.bf16 %v1282_v63, %v1280_v62  ;;  %v1293_v37 = vld [vmem:[#allocation5 + $0x70] sm:$0xff]  ;;  %v1303_v46 = vld [vmem:[#allocation5 + $0xc0] sm:$0xff]  ;;  %v1308_v58 = vld [vmem:[#allocation5 + $0xe8] sm:$0xff] }
 0x1e0   :  { %v841_v3 = vsel %vm818_vm13, %v2476_v13, %v840_v4  ;;  %v2536_v48 = vsel %vm90_vm0, %v777_v31, 0.0  ;;  %v1854_v18 = vpack.c.bf16 %v1281_v12, %v1279_v2  ;;  %v862_v25 = vrot.slane %v2528_v61, 1  ;;  %v1310_v59 = vld [vmem:[#allocation5 + $0xf8] sm:$0xff]  ;;  %v1307_v56 = vld [vmem:[#allocation5 + $0xe0] sm:$0xff]  ;;  %v1309_v31 = vld [vmem:[#allocation5 + $0xf0] sm:$0xff] }
 0x1e1   :  { %v2540_v0 = vsel %vm820_vm14, %v2478_v16, %v841_v3  ;;  %1853 = vmatprep.subr.bf16.mxu0 %v1852_v7  ;;  %v865_v24 = vrot.slane %v2536_v48, 1  ;;  %v1856_v13 = vpack.c.bf16 %v1286_v15, %v1284_v9  ;;  %v1858_v14 = vpack.c.bf16 %v1285_v19, %v1283_v40  ;;  %v1312_v40 = vld [vmem:[#allocation5 + $0x108] sm:$0xff]  ;;  %v1314_v19 = vld [vmem:[#allocation5 + $0x118] sm:$0xff] }
 0x1e2   :  { %v863_v21 = vrot.slane %v2540_v0, 1  ;;  %1855 = vmatpush1.bf16.msra.mxu0 %v1854_v18  ;;  %v1860_v16 = vpack.c.bf16 %v1290_v10, %v1288_v20  ;;  %v1862_v34 = vpack.c.bf16 %v1289_v27, %v1287_v35  ;;  %v1864_v36 = vpack.c.bf16 %v1294_v29, %v1292_v32  ;;  %v1311_v20 = vld [vmem:[#allocation5 + $0x100] sm:$0xff]  ;;  %v1313_v10 = vld [vmem:[#allocation5 + $0x110] sm:$0xff]  ;;  %v1324_v32 = vld [vmem:[#allocation5 + $0x168] sm:$0xff] }
 0x1e3   :  { %1857 = vmatprep.subr.bf16.mxu0 %v1856_v13  ;;  %v1866_v43 = vpack.c.bf16 %v1293_v37, %v1291_v42  ;;  %v1868_v45 = vpack.c.bf16 %v1298_v39, %v1296_v38  ;;  %v1870_v50 = vpack.c.bf16 %v1297_v49, %v1295_v47  ;;  %v1872_v6 = vpack.c.bf16 %v1302_v41, %v1300_v33  ;;  %v1317_v13 = vld [vmem:[#allocation5 + $0x130] sm:$0xff]  ;;  %v1326_v29 = vld [vmem:[#allocation5 + $0x178] sm:$0xff]  ;;  %v1328_v38 = vld [vmem:[#allocation5 + $0x188] sm:$0xff] }
 0x1e4   :  { %v866_v22 = vsel %vm123_vm3, %v863_v21, %v865_v24  ;;  %v864_v26 = vsel %vm123_vm3, %v862_v25, %v863_v21  ;;  %v1874_v28 = vpack.c.bf16 %v1301_v54, %v1299_v53  ;;  %v1876_v17 = vpack.c.bf16 %v1306_v55, %v1304_v8  ;;  %v1315_v25 = vld [vmem:[#allocation5 + $0x120] sm:$0xff]  ;;  %v1321_v35 = vld [vmem:[#allocation5 + $0x150] sm:$0xff]  ;;  %v1330_v39 = vld [vmem:[#allocation5 + $0x198] sm:$0xff] }
 0x1e5   :  { %873 = vrot.lane.b32.xlu1 %v866_v22, %s2108_s2  ;;  %871 = vrot.lane.b32.xlu0 %v864_v26, %s2108_s2  ;;  %v1878_v60 = vpack.c.bf16 %v1305_v57, %v1303_v46  ;;  %v1880_v30 = vpack.c.bf16 %v1310_v59, %v1308_v58  ;;  %v1882_v23 = vpack.c.bf16 %v1309_v31, %v1307_v56  ;;  %v885_v2 = vrot.slane %v2540_v0, 2  ;;  %v1320_v22 = vld [vmem:[#allocation5 + $0x148] sm:$0xff]  ;;  %v1322_v26 = vld [vmem:[#allocation5 + $0x158] sm:$0xff]  ;;  %v1325_v42 = vld [vmem:[#allocation5 + $0x170] sm:$0xff] }
 0x1e6   :  { %1859 = vmatpush1.bf16.msra.mxu0 %v1858_v14  ;;  %v884_v4 = vrot.slane %v2528_v61, 2  ;;  %v887_v15 = vrot.slane %v2536_v48, 2  ;;  %v1884_v18 = vpack.c.bf16 %v1314_v19, %v1312_v40  ;;  %v1886_v21 = vpack.c.bf16 %v1313_v10, %v1311_v20  ;;  %v1318_v48 = vld [vmem:[#allocation5 + $0x138] sm:$0xff]  ;;  %v1329_v47 = vld [vmem:[#allocation5 + $0x190] sm:$0xff]  ;;  %v1332_v33 = vld [vmem:[#allocation5 + $0x1a8] sm:$0xff] }
 0x1e7   :  { %1861 = vmatprep.subr.bf16.mxu0 %v1860_v16  ;;  %v1890_v14 = vpack.c.bf16 %v1317_v13, %v1315_v25  ;;  %v1319_v16 = vld [vmem:[#allocation5 + $0x140] sm:$0xff]  ;;  %v1334_v41 = vld [vmem:[#allocation5 + $0x1b8] sm:$0xff]  ;;  %v1333_v53 = vld [vmem:[#allocation5 + $0x1b0] sm:$0xff] }
 0x1e8   :  { %v886_v12 = vsel %vm166_vm2, %v884_v4, %v885_v2  ;;  %v1894_v27 = vpack.c.bf16 %v1321_v35, %v1319_v16  ;;  %v1336_v8 = vld [vmem:[#allocation5 + $0x1c8] sm:$0xff]  ;;  %v1338_v55 = vld [vmem:[#allocation5 + $0x1d8] sm:$0xff]  ;;  %v1337_v46 = vld [vmem:[#allocation5 + $0x1d0] sm:$0xff] }
 0x1e9   :  { %v1340_v58 = vld [vmem:[#allocation5 + $0x1e8] sm:$0xff]  ;;  %v1342_v59 = vld [vmem:[#allocation5 + $0x1f8] sm:$0xff]  ;;  %v1341_v56 = vld [vmem:[#allocation5 + $0x1f0] sm:$0xff] }
 0x1ea   :  { %1863 = vmatpush1.bf16.msra.mxu0 %v1862_v34  ;;  %v1896_v34 = vpack.c.bf16 %v1326_v29, %v1324_v32  ;;  %v1574_v4 = vld [vmem:[#allocation7] sm:$0xff]  ;;  %v2569_v19 = vld [vmem:[%s2681_s4] ss:$0 sm:$0xff] }
 0x1eb   :  { %1865 = vmatprep.subr.bf16.mxu0 %v1864_v36  ;;  %v1323_v36 = vld [vmem:[#allocation5 + $0x160] sm:$0xff] }
 0x1ec   :  { %v1898_v37 = vpack.c.bf16 %v1325_v42, %v1323_v36 }
 0x1ee   :  { %1867 = vmatpush1.bf16.msra.mxu0 %v1866_v43  ;;  %v1900_v43 = vpack.c.bf16 %v1330_v39, %v1328_v38 }
 0x1ef   :  { %1869 = vmatprep.subr.bf16.mxu0 %v1868_v45  ;;  %v1327_v45 = vld [vmem:[#allocation5 + $0x180] sm:$0xff] }
 0x1f0   :  { %v1902_v49 = vpack.c.bf16 %v1329_v47, %v1327_v45 }
 0x1f2   :  { %1871 = vmatpush1.bf16.msra.mxu0 %v1870_v50  ;;  %v1904_v50 = vpack.c.bf16 %v1334_v41, %v1332_v33 }
 0x1f3   :  { %1873 = vmatprep.subr.bf16.mxu0 %v1872_v6  ;;  %v1331_v6 = vld [vmem:[#allocation5 + $0x1a0] sm:$0xff] }
 0x1f4   :  { %v1906_v54 = vpack.c.bf16 %v1333_v53, %v1331_v6 }
 0x1f6   :  { %1875 = vmatpush1.bf16.msra.mxu0 %v1874_v28  ;;  %v1908_v28 = vpack.c.bf16 %v1338_v55, %v1336_v8 }
 0x1f7   :  { %1877 = vmatprep.subr.bf16.mxu0 %v1876_v17  ;;  %v1335_v17 = vld [vmem:[#allocation5 + $0x1c0] sm:$0xff] }
 0x1f8   :  { %v1910_v57 = vpack.c.bf16 %v1337_v46, %v1335_v17 }
 0x1fa   :  { %1879 = vmatpush1.bf16.msra.mxu0 %v1878_v60  ;;  %v1912_v60 = vpack.c.bf16 %v1342_v59, %v1340_v58 }
 0x1fb   :  { %1881 = vmatprep.subr.bf16.mxu0 %v1880_v30  ;;  %v1339_v30 = vld [vmem:[#allocation5 + $0x1e0] sm:$0xff] }
 0x1fc   :  { %v1914_v31 = vpack.c.bf16 %v1341_v56, %v1339_v30 }
 0x1fe   :  { %1883 = vmatpush1.bf16.msra.mxu0 %v1882_v23  ;;  %v1344_v23 = vld [vmem:[#allocation5 + $0x208] sm:$0xff] }
 0x1ff   :  { %1885 = vmatprep.subr.bf16.mxu0 %v1884_v18 }
 0x202   :  { %1887 = vmatpush1.bf16.msra.mxu0 %v1886_v21 }
 0x24b   :  { %v870_v63 = vpop.permute.xlu1 %869 }
 0x24c   :  { %v891_v7 = vsel %vm889_vm15, %v2487_v5, %v870_v63  ;;  %v1590_v63 = vld [vmem:[#allocation7 + $0x80] sm:$0xff] }
 0x250   :  { %v868_v44 = vpop.permute.xlu0 %867 }
 0x251   :  { %v890_v62 = vsel %vm889_vm15, %v2503_v51, %v868_v44  ;;  %v1346_v44 = vld [vmem:[#allocation5 + $0x218] sm:$0xff] }
 0x252   :  { %998 = vmatmul.mubr.f32.vlgmr.msra.gmra.mrb[8].mxu1 %v890_v62  ;;  %v1916_v62 = vpack.c.bf16 %v1346_v44, %v1344_v23 }
 0x253   :  { %1748 = vmatprep.mubr.msk.f32.mxu1 %vm889_vm15, %v2531_v52  ;;  %v888_v52 = vsel %vm166_vm2, %v885_v2, %v887_v15  ;;  %v1591_v2 = vld [vmem:[#allocation7 + $0x88] sm:$0xff] }
 0x256   :  { %1003 = vmatmul.mubr.f32.gmra.mrb[10].mxu1 %v891_v7  ;;  %v1948_v7 = vpack.c.bf16 %v1591_v2, %v1590_v63 }
 0x257   :  { %1749 = vmatprep.mubr.msk.f32.mxu1 %vm889_vm15, %v886_v12  ;;  %v872_v9 = vpop.permute.xlu0 %871  ;;  %v874_v3 = vpop.permute.xlu1 %873  ;;  %v1575_v12 = vld [vmem:[#allocation7 + $0x8] sm:$0xff] }
 0x258   :  { %v892_v51 = vsel %vm889_vm15, %v2528_v61, %v872_v9  ;;  %v893_v5 = vsel %vm889_vm15, %v2540_v0, %v874_v3  ;;  %v1316_v61 = vld [vmem:[#allocation5 + $0x128] sm:$0xff]  ;;  %v1892_v0 = vpack.c.bf16 %v1322_v26, %v1320_v22  ;;  %v1592_v9 = vld [vmem:[#allocation7 + $0x90] sm:$0xff]  ;;  %v1950_v15 = vpack.c.bf16 %v1575_v12, %v1574_v4  ;;  %1949 = vmatprep.subr.bf16.mxu1 %v1948_v7 }
 0x259   :  { %v1888_v24 = vpack.c.bf16 %v1318_v48, %v1316_v61 }
 0x25a   :  { %1008 = vmatmul.mubr.f32.gmra.mrb[12].mxu1 %v892_v51  ;;  %v1593_v51 = vld [vmem:[#allocation7 + $0x98] sm:$0xff] }
 0x25b   :  { %1750 = vmatprep.mubr.msk.f32.mxu1 %vm889_vm15, %v888_v52  ;;  %1889 = vmatprep.subr.bf16.mxu0 %v1888_v24  ;;  %v1952_v3 = vpack.c.bf16 %v1593_v51, %v1592_v9  ;;  %v1576_v52 = vld [vmem:[#allocation7 + $0x10] sm:$0xff] }
 0x25c   :  { %1891 = vmatpush1.bf16.msra.mxu0 %v1890_v14  ;;  %1951 = vmatpush3.bf16.msra.mxu1 %v1950_v15 }
 0x25d   :  { %1893 = vmatprep.subr.bf16.mxu0 %v1892_v0  ;;  %1953 = vmatprep.subr.bf16.mxu1 %v1952_v3 }
 0x25e   :  { %1013 = vmatmul.mubr.f32.gmra.mrb[14].mxu1 %v893_v5  ;;  %v1577_v5 = vld [vmem:[#allocation7 + $0x18] sm:$0xff] }
 0x25f   :  { %v1954_v40 = vpack.c.bf16 %v1577_v5, %v1576_v52 }
 0x260   :  { %1895 = vmatpush1.bf16.msra.mxu0 %v1894_v27 }
 0x261   :  { %1897 = vmatprep.subr.bf16.mxu0 %v1896_v34  ;;  %1955 = vmatpush3.bf16.msra.mxu1 %v1954_v40 }
 0x264   :  { %1899 = vmatpush1.bf16.msra.mxu0 %v1898_v37 }
 0x265   :  { %1901 = vmatprep.subr.bf16.mxu0 %v1900_v43 }
 0x268   :  { %1903 = vmatpush1.bf16.msra.mxu0 %v1902_v49 }
 0x269   :  { %1905 = vmatprep.subr.bf16.mxu0 %v1904_v50 }
 0x26c   :  { %1907 = vmatpush1.bf16.msra.mxu0 %v1906_v54 }
 0x26d   :  { %1909 = vmatprep.subr.bf16.mxu0 %v1908_v28 }
 0x270   :  { %1911 = vmatpush1.bf16.msra.mxu0 %v1910_v57 }
 0x271   :  { %1913 = vmatprep.subr.bf16.mxu0 %v1912_v60 }
 0x274   :  { %1915 = vmatpush1.bf16.msra.mxu0 %v1914_v31 }
 0x275   :  { %1917 = vmatprep.subr.bf16.mxu0 %v1916_v62 }
 0x325   :  { %v999_v18 = vpop.f32.mrb[8].mxu1 }
 0x326   :  { %v1000_v20 = vadd.f32 %v2569_v19, %v999_v18  ;;  %v1001_v10 = vpop.f32.mrb[9].mxu1 }
 0x328   :  { %v1018_v21 = vmax.f32 %v1000_v20, 0.0 }
 0x329   :  { %v1004_v61 = vpop.f32.mrb[10].mxu1 }
 0x32a   :  { %v1026_v48 = vcombine.high %v1018_v21, %v1018_v21  ;;  %v1033_v24 = vrot.slane %v1018_v21, %v2348_v11  ;;  %v1005_v25 = vadd.f32 %v2569_v19, %v1004_v61  ;;  %v1006_v13 = vpop.f32.mrb[11].mxu1 }
 0x32c   :  { %v1040_v14 = vrot.slane %v1026_v48, %v2348_v11  ;;  %v1041_v22 = vcombine.high %v1033_v24, %v1033_v24  ;;  %v1111_v26 = vsel %vm1110_vm1, %v1033_v24, -inf  ;;  %v1019_v0 = vmax.f32 %v1005_v25, 0.0 }
 0x32d   :  { %v1112_v16 = vrot.slane %v1111_v26, 4  ;;  %v1009_v35 = vpop.f32.mrb[12].mxu1 }
 0x32e   :  { %v1042_v27 = vcombine.high %v1040_v14, %v1040_v14  ;;  %v1118_v32 = vsel %vm1110_vm1, %v1041_v22, -inf  ;;  %v1125_v29 = vsel %vm1110_vm1, %v1040_v14, -inf  ;;  %v1043_v34 = vcombine.high %v1019_v0, %v1019_v0  ;;  %v1011_v36 = vpop.f32.mrb[13].mxu1 }
 0x32f   :  { %v1113_v42 = vmax.f32 %v1111_v26, %v1112_v16  ;;  %v1119_v37 = vrot.slane %v1118_v32, 4  ;;  %v1126_v38 = vrot.slane %v1125_v29, 4  ;;  %v1050_v39 = vrot.slane %v1019_v0, %v2348_v11 }
 0x330   :  { %v1132_v43 = vsel %vm1110_vm1, %v1042_v27, -inf  ;;  %v1057_v45 = vrot.slane %v1043_v34, %v2348_v11  ;;  %v1010_v47 = vadd.f32 %v2569_v19, %v1009_v35 }
 0x331   :  { %v1114_v49 = vrot.slane %v1113_v42, 2  ;;  %v1120_v33 = vmax.f32 %v1118_v32, %v1119_v37  ;;  %v1127_v41 = vmax.f32 %v1125_v29, %v1126_v38  ;;  %v1133_v50 = vrot.slane %v1132_v43, 4  ;;  %v1014_v6 = vpop.f32.mrb[14].mxu1 }
 0x332   :  { %v1058_v53 = vcombine.high %v1050_v39, %v1050_v39  ;;  %v1059_v54 = vcombine.high %v1057_v45, %v1057_v45  ;;  %v1139_v8 = vsel %vm1110_vm1, %v1050_v39, -inf  ;;  %v1153_v55 = vsel %vm1110_vm1, %v1057_v45, -inf  ;;  %v1016_v28 = vpop.f32.mrb[15].mxu1 }
 0x333   :  { %v1115_v17 = vmax.f32 %v1113_v42, %v1114_v49  ;;  %v1121_v46 = vrot.slane %v1120_v33, 2  ;;  %v1128_v57 = vrot.slane %v1127_v41, 2  ;;  %v1134_v58 = vmax.f32 %v1132_v43, %v1133_v50 }
 0x334   :  { %v1140_v59 = vrot.slane %v1139_v8, 4  ;;  %v1146_v60 = vsel %vm1110_vm1, %v1058_v53, -inf  ;;  %v1154_v30 = vrot.slane %v1153_v55, 4  ;;  %v1160_v56 = vsel %vm1110_vm1, %v1059_v54, -inf }
 0x335   :  { %v1116_v31 = vrot.slane %v1115_v17, 1  ;;  %v1122_v23 = vmax.f32 %v1120_v33, %v1121_v46  ;;  %v1129_v44 = vmax.f32 %v1127_v41, %v1128_v57  ;;  %v1135_v62 = vrot.slane %v1134_v58, 2 }
 0x336   :  { %v1141_v63 = vmax.f32 %v1139_v8, %v1140_v59  ;;  %v1147_v2 = vrot.slane %v1146_v60, 4  ;;  %v1155_v4 = vmax.f32 %v1153_v55, %v1154_v30  ;;  %v1161_v7 = vrot.slane %v1160_v56, 4 }
 0x337   :  { %v1117_v12 = vmax.f32 %v1115_v17, %v1116_v31  ;;  %v1123_v9 = vrot.slane %v1122_v23, 1  ;;  %v1130_v51 = vrot.slane %v1129_v44, 1  ;;  %v1136_v15 = vmax.f32 %v1134_v58, %v1135_v62 }
 0x338   :  { %v1142_v3 = vrot.slane %v1141_v63, 2  ;;  %v1148_v52 = vmax.f32 %v1146_v60, %v1147_v2  ;;  %v1156_v5 = vrot.slane %v1155_v4, 2  ;;  %v2586_v40 = vmax.f32 %v1160_v56, %v1161_v7 }
 0x339   :  { %v1124_v18 = vmax.f32 %v1122_v23, %v1123_v9  ;;  %v2588_v20 = vmax.f32 %v1129_v44, %v1130_v51  ;;  %v1137_v10 = vrot.slane %v1136_v15, 1  ;;  %v1020_v21 = vmax.f32 %v1010_v47, 0.0 }
 0x33a   :  { %v1143_v61 = vmax.f32 %v1141_v63, %v1142_v3  ;;  %v1149_v48 = vrot.slane %v1148_v52, 2  ;;  %v2590_v24 = vmax.f32 %v1155_v4, %v1156_v5  ;;  %v1015_v25 = vadd.f32 %v2569_v19, %v1014_v6 }
 0x33b   :  { %v2593_v13 = vmax.f32 %v1136_v15, %v1137_v10  ;;  %v2596_v14 = vsel %vm810_vm8, %v1124_v18, %v1117_v12  ;;  %v1060_v22 = vcombine.high %v1020_v21, %v1020_v21  ;;  %v1067_v26 = vrot.slane %v1020_v21, %v2348_v11 }
 0x33c   :  { %v1144_v0 = vrot.slane %v1143_v61, 1  ;;  %v1150_v16 = vmax.f32 %v1148_v52, %v1149_v48  ;;  %v1158_v35 = vrot.slane %v2590_v24, 1  ;;  %v1021_v27 = vmax.f32 %v1015_v25, 0.0 }
 0x33d   :  { %v1074_v32 = vrot.slane %v1060_v22, %v2348_v11  ;;  %v1075_v29 = vcombine.high %v1067_v26, %v1067_v26  ;;  %v1167_v34 = vsel %vm1110_vm1, %v1067_v26, -inf  ;;  %v1163_v19 = vrot.slane %v2586_v40, 2 }
 0x33e   :  { %v2603_v36 = vmax.f32 %v1143_v61, %v1144_v0  ;;  %v1151_v42 = vrot.slane %v1150_v16, 1  ;;  %v1168_v37 = vrot.slane %v1167_v34, 4  ;;  %v1077_v38 = vcombine.high %v1021_v27, %v1021_v27 }
 0x33f   :  { %v1076_v39 = vcombine.high %v1074_v32, %v1074_v32  ;;  %v1174_v43 = vsel %vm1110_vm1, %v1075_v29, -inf  ;;  %v1181_v45 = vsel %vm1110_vm1, %v1074_v32, -inf  ;;  %v1084_v47 = vrot.slane %v1021_v27, %v2348_v11 }
 0x340   :  { %v2608_v49 = vmax.f32 %v1150_v16, %v1151_v42  ;;  %v1169_v33 = vmax.f32 %v1167_v34, %v1168_v37  ;;  %v1175_v41 = vrot.slane %v1174_v43, 4  ;;  %v1182_v50 = vrot.slane %v1181_v45, 4 }
 0x341   :  { %v1188_v6 = vsel %vm1110_vm1, %v1076_v39, -inf  ;;  %v1091_v53 = vrot.slane %v1077_v38, %v2348_v11  ;;  %v1092_v54 = vcombine.high %v1084_v47, %v1084_v47  ;;  %v1195_v8 = vsel %vm1110_vm1, %v1084_v47, -inf }
 0x342   :  { %v1170_v55 = vrot.slane %v1169_v33, 2  ;;  %v1176_v28 = vmax.f32 %v1174_v43, %v1175_v41  ;;  %v1183_v17 = vmax.f32 %v1181_v45, %v1182_v50  ;;  %v1189_v46 = vrot.slane %v1188_v6, 4 }
 0x343   :  { %v1093_v57 = vcombine.high %v1091_v53, %v1091_v53  ;;  %v1196_v58 = vrot.slane %v1195_v8, 4  ;;  %v1202_v59 = vsel %vm1110_vm1, %v1092_v54, -inf  ;;  %v1209_v60 = vsel %vm1110_vm1, %v1091_v53, -inf  ;;  %v1343_v54 = vld [vmem:[#allocation5 + $0x200] sm:$0xff] }
 0x344   :  { %v1171_v30 = vmax.f32 %v1169_v33, %v1170_v55  ;;  %v1177_v56 = vrot.slane %v1176_v28, 2  ;;  %v1184_v31 = vrot.slane %v1183_v17, 2  ;;  %v1190_v23 = vmax.f32 %v1188_v6, %v1189_v46 }
 0x345   :  { %v1197_v44 = vmax.f32 %v1195_v8, %v1196_v58  ;;  %v1203_v62 = vrot.slane %v1202_v59, 4  ;;  %v1210_v11 = vrot.slane %v1209_v60, 4  ;;  %v1216_v63 = vsel %vm1110_vm1, %v1093_v57, -inf }
 0x346   :  { %v1172_v2 = vrot.slane %v1171_v30, 1  ;;  %v1178_v4 = vmax.f32 %v1176_v28, %v1177_v56  ;;  %v1185_v7 = vmax.f32 %v1183_v17, %v1184_v31  ;;  %v1191_v12 = vrot.slane %v1190_v23, 2  ;;  %v1345_v28 = vld [vmem:[#allocation5 + $0x210] sm:$0xff]  ;;  %v1350_v17 = vld [vmem:[#allocation5 + $0x238] sm:$0xff] }
 0x347   :  { %v1198_v9 = vrot.slane %v1197_v44, 2  ;;  %v1204_v51 = vmax.f32 %v1202_v59, %v1203_v62  ;;  %v1211_v15 = vmax.f32 %v1209_v60, %v1210_v11  ;;  %v1217_v3 = vrot.slane %v1216_v63, 4  ;;  %v1581_v31 = vld [vmem:[#allocation7 + $0x38] sm:$0xff] }
 0x348   :  { %v1173_v52 = vmax.f32 %v1171_v30, %v1172_v2  ;;  %v1179_v5 = vrot.slane %v1178_v4, 1  ;;  %v1186_v18 = vrot.slane %v1185_v7, 1  ;;  %v1192_v10 = vmax.f32 %v1190_v23, %v1191_v12  ;;  %v1347_v2 = vld [vmem:[#allocation5 + $0x220] sm:$0xff] }
 0x349   :  { %v1199_v21 = vmax.f32 %v1197_v44, %v1198_v9  ;;  %v1205_v61 = vrot.slane %v1204_v51, 2  ;;  %v1212_v48 = vrot.slane %v1211_v15, 2  ;;  %v1218_v25 = vmax.f32 %v1216_v63, %v1217_v3 }
 0x34a   :  { %v1180_v22 = vmax.f32 %v1178_v4, %v1179_v5  ;;  %v1187_v26 = vmax.f32 %v1185_v7, %v1186_v18  ;;  %v1193_v0 = vrot.slane %v1192_v10, 1  ;;  %v1159_v16 = vmax.f32 %v2590_v24, %v1158_v35  ;;  %v1349_v4 = vld [vmem:[#allocation5 + $0x230] sm:$0xff] }
 0x34b   :  { %v1200_v27 = vrot.slane %v1199_v21, 1  ;;  %v1206_v32 = vmax.f32 %v1204_v51, %v1205_v61  ;;  %v1213_v29 = vmax.f32 %v1211_v15, %v1212_v48  ;;  %v1219_v34 = vrot.slane %v1218_v25, 2  ;;  %v1352_v51 = vld [vmem:[#allocation5 + $0x248] sm:$0xff]  ;;  %v1354_v15 = vld [vmem:[#allocation5 + $0x258] sm:$0xff]  ;;  %v1351_v61 = vld [vmem:[#allocation5 + $0x240] sm:$0xff] }
 0x34c   :  { %v1194_v42 = vmax.f32 %v1192_v10, %v1193_v0  ;;  %v1245_v37 = vsel %vm810_vm8, %v1180_v22, %v1173_v52  ;;  %v1164_v38 = vmax.f32 %v2586_v40, %v1163_v19  ;;  %v1240_v39 = vsel %vm812_vm9, %v2588_v20, %v2596_v14  ;;  %v1353_v48 = vld [vmem:[#allocation5 + $0x250] sm:$0xff]  ;;  %v1358_v22 = vld [vmem:[#allocation5 + $0x278] sm:$0xff] }
 0x34d   :  { %v1246_v43 = vsel %vm812_vm9, %v1187_v26, %v1245_v37  ;;  %v1201_v45 = vmax.f32 %v1199_v21, %v1200_v27  ;;  %v1207_v47 = vrot.slane %v1206_v32, 1  ;;  %v1214_v33 = vrot.slane %v1213_v29, 1  ;;  %v1355_v27 = vld [vmem:[#allocation5 + $0x260] sm:$0xff] }
 0x34e   :  { %v1165_v41 = vrot.slane %v1164_v38, 1  ;;  %v1241_v24 = vsel %vm814_vm11, %v2593_v13, %v1240_v39  ;;  %v1220_v35 = vmax.f32 %v1218_v25, %v1219_v34  ;;  %v1247_v50 = vsel %vm814_vm11, %v1194_v42, %v1246_v43  ;;  %v1348_v13 = vld [vmem:[#allocation5 + $0x228] sm:$0xff]  ;;  %v1362_v34 = vld [vmem:[#allocation5 + $0x298] sm:$0xff]  ;;  %v1361_v39 = vld [vmem:[#allocation5 + $0x290] sm:$0xff] }
 0x34f   :  { %v1208_v6 = vmax.f32 %v1206_v32, %v1207_v47  ;;  %v1215_v53 = vmax.f32 %v1213_v29, %v1214_v33  ;;  %v1242_v40 = vsel %vm816_vm12, %v2603_v36, %v1241_v24  ;;  %v1248_v19 = vsel %vm816_vm12, %v1201_v45, %v1247_v50  ;;  %v1356_v25 = vld [vmem:[#allocation5 + $0x268] sm:$0xff]  ;;  %v1357_v32 = vld [vmem:[#allocation5 + $0x270] sm:$0xff]  ;;  %v1366_v45 = vld [vmem:[#allocation5 + $0x2b8] sm:$0xff] }
 0x350   :  { %v1166_v20 = vmax.f32 %v1164_v38, %v1165_v41  ;;  %v1243_v14 = vsel %vm818_vm13, %v2608_v49, %v1242_v40  ;;  %v1221_v8 = vrot.slane %v1220_v35, 1  ;;  %v1918_v23 = vpack.c.bf16 %v1345_v28, %v1343_v54  ;;  %v1360_v29 = vld [vmem:[#allocation5 + $0x288] sm:$0xff]  ;;  %v1359_v38 = vld [vmem:[#allocation5 + $0x280] sm:$0xff]  ;;  %v1365_v24 = vld [vmem:[#allocation5 + $0x2b0] sm:$0xff] }
 0x351   :  { %v1244_v55 = vsel %vm820_vm14, %v1159_v16, %v1243_v14  ;;  %v1249_v46 = vsel %vm818_vm13, %v1208_v6, %v1248_v19  ;;  %v1920_v44 = vpack.c.bf16 %v1350_v17, %v1348_v13  ;;  %v1922_v18 = vpack.c.bf16 %v1349_v4, %v1347_v2  ;;  %v1364_v43 = vld [vmem:[#allocation5 + $0x2a8] sm:$0xff]  ;;  %v1363_v41 = vld [vmem:[#allocation5 + $0x2a0] sm:$0xff]  ;;  %v1370_v50 = vld [vmem:[#allocation5 + $0x2d8] sm:$0xff] }
 0x352   :  { %v1255_v57 = vsel %vm90_vm0, 0.0, %v1244_v55  ;;  %v1257_v58 = vsel %vm90_vm0, %v1166_v20, 0.0  ;;  %v1222_v36 = vmax.f32 %v1220_v35, %v1221_v8  ;;  %v1250_v59 = vsel %vm820_vm14, %v1215_v53, %v1249_v46  ;;  %v1368_v35 = vld [vmem:[#allocation5 + $0x2c8] sm:$0xff]  ;;  %v1367_v40 = vld [vmem:[#allocation5 + $0x2c0] sm:$0xff]  ;;  %v1369_v19 = vld [vmem:[#allocation5 + $0x2d0] sm:$0xff] }
 0x353   :  { %v1263_v60 = vrot.slane %v1255_v57, 1  ;;  %v1264_v30 = vrot.slane %v1257_v58, 1  ;;  %v1271_v56 = vrot.slane %v1255_v57, 2  ;;  %v1272_v49 = vrot.slane %v1257_v58, 2  ;;  %v1372_v20 = vld [vmem:[#allocation5 + $0x2e8] sm:$0xff]  ;;  %v1374_v14 = vld [vmem:[#allocation5 + $0x2f8] sm:$0xff] }
 0x354   :  { %v1256_v62 = vsel %vm90_vm0, 0.0, %v1250_v59  ;;  %v1258_v11 = vsel %vm90_vm0, %v1222_v36, 0.0  ;;  %v1924_v21 = vpack.c.bf16 %v1354_v15, %v1352_v51  ;;  %v1926_v26 = vpack.c.bf16 %v1353_v48, %v1351_v61  ;;  %v1373_v28 = vld [vmem:[#allocation5 + $0x2f0] sm:$0xff]  ;;  %v1594_v17 = vld [vmem:[#allocation7 + $0xa0] sm:$0xff]  ;;  %v1595_v46 = vld [vmem:[#allocation7 + $0xa8] sm:$0xff] }
 0x355   :  { %v1265_v63 = vsel %vm123_vm3, %v1263_v60, %v1264_v30  ;;  %v1266_v7 = vrot.slane %v1256_v62, 1  ;;  %v1267_v12 = vrot.slane %v1258_v11, 1  ;;  %v1273_v9 = vsel %vm166_vm2, %v1271_v56, %v1272_v49  ;;  %v1578_v58 = vld [vmem:[#allocation7 + $0x20] sm:$0xff]  ;;  %v1579_v36 = vld [vmem:[#allocation7 + $0x28] sm:$0xff]  ;;  %v1596_v60 = vld [vmem:[#allocation7 + $0xb0] sm:$0xff] }
 0x356   :  { %1451 = vmatprep.mubr.f32.mxu0 %v1265_v63  ;;  %v1274_v3 = vrot.slane %v1256_v62, 2  ;;  %v1275_v52 = vrot.slane %v1258_v11, 2  ;;  %v2109_v0 = vmov 0.0   ;;  %v1928_v16 = vpack.c.bf16 %v1358_v22, %v1356_v25  ;;  %v1597_v30 = vld [vmem:[#allocation7 + $0xb8] sm:$0xff]  ;;  %v1580_v49 = vld [vmem:[#allocation7 + $0x30] sm:$0xff]  ;;  %v1599_v62 = vld [vmem:[#allocation7 + $0xc8] sm:$0xff] }
 0x357   :  { %1752 = vmatmul.mubr.msk.f32.vlgmr.msra.gmra.mrb[0].mxu0 %vm2637_vm4, %v1244_v55  ;;  %v1268_v5 = vsel %vm123_vm3, %v1266_v7, %v1267_v12  ;;  %v1930_v42 = vpack.c.bf16 %v1357_v32, %v1355_v27  ;;  %v1932_v37 = vpack.c.bf16 %v1362_v34, %v1360_v29  ;;  %v1934_v47 = vpack.c.bf16 %v1361_v39, %v1359_v38  ;;  %v1371_v55 = vld [vmem:[#allocation5 + $0x2e0] sm:$0xff]  ;;  %v1583_v2 = vld [vmem:[#allocation7 + $0x48] sm:$0xff]  ;;  %v1600_v7 = vld [vmem:[#allocation7 + $0xd0] sm:$0xff] }
 0x358   :  { %1919 = vmatpush1.bf16.msra.mxu0 %v1918_v23  ;;  %1457 = vmatprep.mubr.f32.mxu0 %v1268_v5  ;;  %v1276_v10 = vsel %vm166_vm2, %v1274_v3, %v1275_v52  ;;  %v1936_v33 = vpack.c.bf16 %v1366_v45, %v1364_v43  ;;  %v1938_v6 = vpack.c.bf16 %v1365_v24, %v1363_v41  ;;  %v1582_v63 = vld [vmem:[#allocation7 + $0x40] sm:$0xff]  ;;  %v1601_v12 = vld [vmem:[#allocation7 + $0xd8] sm:$0xff]  ;;  %v1584_v51 = vld [vmem:[#allocation7 + $0x50] sm:$0xff]  ;;  %v1379_v27 = vsub.s32 0, %v2338_v1 }
 0x359   :  { %1921 = vmatprep.subr.bf16.mxu0 %v1920_v44  ;;  %v1940_v53 = vpack.c.bf16 %v1370_v50, %v1368_v35  ;;  %v1942_v54 = vpack.c.bf16 %v1369_v19, %v1367_v40  ;;  %v1944_v8 = vpack.c.bf16 %v1374_v14, %v1372_v20  ;;  %v1946_v13 = vpack.c.bf16 %v1373_v28, %v1371_v55  ;;  %v1598_v44 = vld [vmem:[#allocation7 + $0xc0] sm:$0xff]  ;;  %v1585_v15 = vld [vmem:[#allocation7 + $0x58] sm:$0xff]  ;;  %v1603_v5 = vld [vmem:[#allocation7 + $0xe8] sm:$0xff] }
 0x35a   :  { %v1956_v57 = vpack.c.bf16 %v1595_v46, %v1594_v17  ;;  %v1960_v56 = vpack.c.bf16 %v1597_v30, %v1596_v60  ;;  %v1962_v23 = vpack.c.bf16 %v1581_v31, %v1580_v49  ;;  %v1964_v11 = vpack.c.bf16 %v1599_v62, %v1598_v44  ;;  %v1602_v52 = vld [vmem:[#allocation7 + $0xe0] sm:$0xff]  ;;  %v1604_v48 = vld [vmem:[#allocation7 + $0xf0] sm:$0xff]  ;;  %v1605_v25 = vld [vmem:[#allocation7 + $0xf8] sm:$0xff] }
 0x35b   :  { %1754 = vmatmul.mubr.msk.f32.gmra.mrb[2].mxu0 %vm2637_vm4, %v1250_v59  ;;  %v1958_v59 = vpack.c.bf16 %v1579_v36, %v1578_v58  ;;  %v1966_v4 = vpack.c.bf16 %v1583_v2, %v1582_v63  ;;  %v1970_v3 = vpack.c.bf16 %v1585_v15, %v1584_v51  ;;  %v1976_v22 = vpack.c.bf16 %v1605_v25, %v1604_v48  ;;  %v1375_v32 = vld [vmem:[%s2683_s6] sm:$0x3] }
 0x35c   :  { %1923 = vmatpush1.bf16.msra.mxu0 %v1922_v18  ;;  %1528 = vmatprep.mubr.f32.mxu0 %v2109_v0  ;;  %v1972_v18 = vpack.c.bf16 %v1603_v5, %v1602_v52  ;;  %v1383_v29 = vsub.s32 1, %v2338_v1  ;;  %v1380_v34 = vrot.slane %v1375_v32, %v1379_v27  ;;  %v1755_v52 = vld [vmem:[%s2685_s8] ss:$0 sm:$0xff] }
 0x35d   :  { %1925 = vmatprep.subr.bf16.mxu0 %v1924_v21  ;;  %1957 = vmatprep.subr.bf16.mxu1 %v1956_v57  ;;  %v1587_v21 = vld [vmem:[#allocation7 + $0x68] sm:$0xff] }
 0x35e   :  { %1959 = vmatpush3.bf16.msra.mxu1 %v1958_v59 }
 0x35f   :  { %1961 = vmatprep.subr.bf16.mxu1 %v1960_v56 }
 0x360   :  { %1927 = vmatpush1.bf16.msra.mxu0 %v1926_v26  ;;  %v1588_v26 = vld [vmem:[#allocation7 + $0x70] sm:$0xff] }
 0x361   :  { %1929 = vmatprep.subr.bf16.mxu0 %v1928_v16 }
 0x362   :  { %1963 = vmatpush3.bf16.msra.mxu1 %v1962_v23 }
 0x363   :  { %1965 = vmatprep.subr.bf16.mxu1 %v1964_v11 }
 0x364   :  { %1931 = vmatpush1.bf16.msra.mxu0 %v1930_v42  ;;  %v1384_v42 = vrot.slane %v1375_v32, %v1383_v29 }
 0x365   :  { %1933 = vmatprep.subr.bf16.mxu0 %v1932_v37 }
 0x366   :  { %1967 = vmatpush3.bf16.msra.mxu1 %v1966_v4 }
 0x368   :  { %1935 = vmatpush1.bf16.msra.mxu0 %v1934_v47 }
 0x369   :  { %1937 = vmatprep.subr.bf16.mxu0 %v1936_v33 }
 0x36c   :  { %1939 = vmatpush1.bf16.msra.mxu0 %v1938_v6 }
 0x36d   :  { %1941 = vmatprep.subr.bf16.mxu0 %v1940_v53 }
 0x370   :  { %1943 = vmatpush1.bf16.msra.mxu0 %v1942_v54 }
 0x371   :  { %1945 = vmatprep.subr.bf16.mxu0 %v1944_v8 }
 0x374   :  { %1947 = vmatpush1.bf16.msra.mxu0 %v1946_v13 }
 0x377   :  { %1529 = vmatmul.mubr.f32.vlgmr.msra.gmra.mrb[0].mxu0 %v1273_v9  ;;  %v1968_v9 = vpack.c.bf16 %v1601_v12, %v1600_v7 }
 0x378   :  { %1534 = vmatprep.mubr.f32.mxu0 %v2109_v0  ;;  %v1589_v0 = vld [vmem:[#allocation7 + $0x78] sm:$0xff] }
 0x379   :  { %1969 = vmatprep.subr.bf16.mxu1 %v1968_v9  ;;  %v1978_v16 = vpack.c.bf16 %v1589_v0, %v1588_v26  ;;  %v2110_v9 = vmov 1966171168  }
 0x37a   :  { %1971 = vmatpush3.bf16.msra.mxu1 %v1970_v3  ;;  %v1693_v51 = vunpack.c.l.s4 %v2110_v9 }
 0x37b   :  { %1535 = vmatmul.mubr.f32.gmra.mrb[2].mxu0 %v1276_v10  ;;  %v1586_v10 = vld [vmem:[#allocation7 + $0x60] sm:$0xff]  ;;  %1973 = vmatprep.subr.bf16.mxu1 %v1972_v18 }
 0x37c   :  { %v1974_v61 = vpack.c.bf16 %v1587_v21, %v1586_v10  ;;  %v1694_v15 = vunpack.c.0.s8 %v1693_v51 }
 0x37e   :  { %1975 = vmatpush3.bf16.msra.mxu1 %v1974_v61  ;;  %v1697_v10 = vsub.s32 %v1694_v15, %v2338_v1 }
 0x37f   :  { %1977 = vmatprep.subr.bf16.mxu1 %v1976_v22 }
 0x382   :  { %1979 = vmatpush3.bf16.msra.mxu1 %v1978_v16 }
 0x44a   :  { %v1530_v37 = vpop.f32.mrb[0].mxu0 }
 0x44b   :  { %v1980_v38 = vadd.f32 %v1530_v37, %v1380_v34  ;;  %v1532_v39 = vpop.f32.mrb[1].mxu0 }
 0x44c   :  { %v1981_v43 = vadd.f32 %v1532_v39, %v1384_v42 }
 0x44d   :  { %v1541_v45 = vmax.f32 %v1980_v38, 0.0 }
 0x44e   :  { %v1542_v47 = vmax.f32 %v1981_v43, 0.0  ;;  %v1536_v33 = vpop.f32.mrb[2].mxu0 }
 0x44f   :  { %v1545_v41 = vrot.slane %v1541_v45, 4  ;;  %v1982_v24 = vadd.f32 %v1536_v33, %v1380_v34  ;;  %v1538_v35 = vpop.f32.mrb[3].mxu0 }
 0x450   :  { %v1551_v50 = vrot.slane %v1542_v47, 4  ;;  %v1983_v6 = vadd.f32 %v1538_v35, %v1384_v42 }
 0x451   :  { %v1546_v53 = vadd.f32 %v1545_v41, %v1541_v45  ;;  %v1543_v40 = vmax.f32 %v1982_v24, 0.0 }
 0x452   :  { %v1552_v19 = vadd.f32 %v1551_v50, %v1542_v47  ;;  %v1544_v20 = vmax.f32 %v1983_v6, 0.0 }
 0x453   :  { %v1547_v14 = vrot.slane %v1546_v53, 2  ;;  %v1557_v54 = vrot.slane %v1543_v40, 4 }
 0x454   :  { %v1553_v8 = vrot.slane %v1552_v19, 2  ;;  %v1563_v55 = vrot.slane %v1544_v20, 4 }
 0x455   :  { %v1548_v28 = vadd.f32 %v1547_v14, %v1546_v53  ;;  %v1558_v13 = vadd.f32 %v1557_v54, %v1543_v40 }
 0x456   :  { %v1554_v17 = vadd.f32 %v1553_v8, %v1552_v19  ;;  %v1564_v46 = vadd.f32 %v1563_v55, %v1544_v20 }
 0x457   :  { %v1549_v57 = vrot.slane %v1548_v28, 1  ;;  %v1559_v58 = vrot.slane %v1558_v13, 2 }
 0x458   :  { %v1555_v36 = vrot.slane %v1554_v17, 1  ;;  %v1565_v59 = vrot.slane %v1564_v46, 2 }
 0x459   :  { %v1560_v60 = vadd.f32 %v1559_v58, %v1558_v13  ;;  %v1550_v56 = vadd.f32 %v1549_v57, %v1548_v28 }
 0x45a   :  { %v1566_v30 = vadd.f32 %v1565_v59, %v1564_v46  ;;  %v1556_v23 = vadd.f32 %v1555_v36, %v1554_v17 }
 0x45b   :  { %v1561_v49 = vrot.slane %v1560_v60, 1  ;;  %v1570_v11 = vmul.f32 0.125, %v1550_v56 }
 0x45c   :  { %v1567_v31 = vrot.slane %v1566_v30, 1  ;;  %v1571_v2 = vmul.f32 0.125, %v1556_v23 }
 0x45d   :  { %v1562_v44 = vadd.f32 %v1561_v49, %v1560_v60 }
 0x45e   :  { %v1568_v62 = vadd.f32 %v1567_v31, %v1566_v30 }
 0x45f   :  { %v1572_v63 = vmul.f32 0.125, %v1562_v44 }
 0x460   :  { %v1573_v4 = vmul.f32 0.125, %v1568_v62 }
 0x461   :  { %v1617_v7 = vsel %vm822_vm10, %v1572_v63, %v1570_v11 }
 0x462   :  { %v1618_v12 = vsel %vm822_vm10, %v1573_v4, %v1571_v2 }
 0x463   :  { %1685 = vmatprep.mubr.f32.mxu1 %v1618_v12 }
 0x464   :  { %1686 = vmatmul.mubr.f32.vlgmr.msra.gmra.mrb[16].mxu1 %v1617_v7 }
 0x537   :  { %v1799_v3 = vpop.f32.mrb[16].mxu1 }
 0x538   :  { %v1800_v5 = vpop.f32.mrb[17].mxu1 }
 0x539   :  { %v1801_v18 = vadd.f32 %v1800_v5, %v1799_v3 }
 0x53b   :  { %v1688_v21 = vadd.f32 %v1801_v18, %v1755_v52 }
 0x53d   :  { %v1698_v61 = vrot.slane %v1688_v21, %v1697_v10 }
 0x53f   :  { %v1699_v48 = vcombine.high %v1698_v61, %v1698_v61  ;;  %1756 = vst.sshfl [vmem:[#allocation8] sm:$0x1 pattern:$0x73625140] %v1698_v61 }
 0x541   :  { %1757 = vst.sshfl [vmem:[#allocation8 + $0x1] sm:$0x1 pattern:$0x73625140] %v1699_v48 }
 0x542   :  { %2080 = shalt.err (!%p2077_p0)
}
 0x543   :  { %s2081_s12 = scalar_lea.hbm %s2686_s9, 32 }
 0x544   :  { %p2082_p1 = scmp.ne.s32.totalorder %s2686_s9, %s2081_s12  ;;  %p2085_p2 = scmp.lt.u32.totalorder %s2081_s12, %s2686_s9 }
 0x546   :  { %p2087_p3 = pnand %p2085_p2, %p2082_p1 }
 0x548   :  { %2090 = shalt.err (!%p2087_p3)
}
 0x549   :  { %1729 = dma.vmem_to_hbm [thread:$0]  %s1724_s29, 32, %s2686_s9, [#allocation4], %s2099_s20, %s2099_s20, %s2105_s21  }
 0x54a   :  { %2095 = dma.done.wait [#allocation4], 32  }
 0x54b   :  { %2096 = vsyncadd [#allocation4], 4294967264 }
 0x54c   :  { %1733 = vsyncpa [#allocation3], 1 }
 0x54d   :  { %1734 = vsyncpa [#allocation6], 1 }
 0x54e   :  { %1735 = vsyncpa [#allocation4], 1 }

</bundles_post_ra>
